<compile_context>
chip_gen: v7x
topology: tpu7x:2x2x1
jax: 0.10.0
libtpu: 0.0.40
codegen_flags: <defaults>
</compile_context>

<pallas_src>
import math
import functools

import jax
import jax.numpy as jnp
from jax.experimental import pallas as pl
from jax.experimental.pallas import tpu as pltpu

_MM_DTYPE = jnp.bfloat16   # MXU operand dtype (accumulation is always f32)


def _tile(dim, target):
    """Use `target` if it divides `dim`, otherwise fall back to the full dim.

    Keeps the (8,128) BlockSpec constraint satisfied for both the toy config
    (full dims) and real GPT-2 sizes (128-aligned tiles)."""
    # TODO(synk): pad non-divisible dims (e.g. vocab=50257) instead of falling
    # back to a single full-dim block.
    return target if dim % target == 0 else dim


def _layernorm_f32(x, g_ref, b_ref, eps=1e-5):
    mean = jnp.mean(x, axis=-1, keepdims=True)
    var = jnp.mean(jnp.square(x - mean), axis=-1, keepdims=True)
    return (x - mean) * jax.lax.rsqrt(var + eps) * g_ref[...] + b_ref[...]


# -------------------- fused LayerNorm + Linear (QKV proj) --------------------

def _ln_linear_kernel(x_ref, g_ref, b_ref, w_ref, bias_ref, o_ref):
    x = x_ref[...].astype(jnp.float32)
    xn = _layernorm_f32(x, g_ref, b_ref).astype(_MM_DTYPE)
    acc = jnp.dot(xn, w_ref[...].astype(_MM_DTYPE),
                  preferred_element_type=jnp.float32)
    o_ref[...] = (acc + bias_ref[...]).astype(o_ref.dtype)


def ln_linear(x2d, gamma, beta, w, bias, *, tm=256, tn=512):
    M, E = x2d.shape
    N = w.shape[1]
    tm = _tile(M, tm)
    tn = _tile(N, tn)
    return pl.pallas_call(
        _ln_linear_kernel,
        out_shape=jax.ShapeDtypeStruct((M, N), x2d.dtype),
        grid=(M // tm, N // tn),
        in_specs=[
            pl.BlockSpec((tm, E), lambda i, j: (i, 0)),
            pl.BlockSpec((1, E), lambda i, j: (0, 0)),
            pl.BlockSpec((1, E), lambda i, j: (0, 0)),
            pl.BlockSpec((E, tn), lambda i, j: (0, j)),
            pl.BlockSpec((1, tn), lambda i, j: (0, j)),
        ],
        out_specs=pl.BlockSpec((tm, tn), lambda i, j: (i, j)),
        compiler_params=pltpu.CompilerParams(
            dimension_semantics=("parallel", "parallel")),
        cost_estimate=pl.CostEstimate(
            flops=2 * M * E * N, transcendentals=0,
            bytes_accessed=4 * (M * E + E * N + M * N)),
    )(x2d, gamma.reshape(1, E), beta.reshape(1, E), w, bias.reshape(1, N))


# ---------------- Linear + bias + residual (attention out proj) --------------

def _linear_residual_kernel(x_ref, w_ref, bias_ref, res_ref, o_ref):
    acc = jnp.dot(x_ref[...].astype(_MM_DTYPE), w_ref[...].astype(_MM_DTYPE),
                  preferred_element_type=jnp.float32)
    o_ref[...] = (acc + bias_ref[...]
                  + res_ref[...].astype(jnp.float32)).astype(o_ref.dtype)


def linear_residual(x2d, w, bias, res2d, *, tm=256, tn=512):
    M, K = x2d.shape
    N = w.shape[1]
    tm = _tile(M, tm)
    tn = _tile(N, tn)
    return pl.pallas_call(
        _linear_residual_kernel,
        out_shape=jax.ShapeDtypeStruct((M, N), x2d.dtype),
        grid=(M // tm, N // tn),
        in_specs=[
            pl.BlockSpec((tm, K), lambda i, j: (i, 0)),
            pl.BlockSpec((K, tn), lambda i, j: (0, j)),
            pl.BlockSpec((1, tn), lambda i, j: (0, j)),
            pl.BlockSpec((tm, tn), lambda i, j: (i, j)),
        ],
        out_specs=pl.BlockSpec((tm, tn), lambda i, j: (i, j)),
        compiler_params=pltpu.CompilerParams(
            dimension_semantics=("parallel", "parallel")),
        cost_estimate=pl.CostEstimate(
            flops=2 * M * K * N, transcendentals=0,
            bytes_accessed=4 * (M * K + K * N + 2 * M * N)),
    )(x2d, w, bias.reshape(1, N), res2d)


# -------------- fused LayerNorm + MLP (fc -> GELU -> proj) + residual --------

def _ln_mlp_residual_kernel(x_ref, g_ref, b_ref, w1_ref, b1_ref,
                            w2_ref, b2_ref, o_ref):
    x = x_ref[...].astype(jnp.float32)
    xn = _layernorm_f32(x, g_ref, b_ref).astype(_MM_DTYPE)
    h = jnp.dot(xn, w1_ref[...].astype(_MM_DTYPE),
                preferred_element_type=jnp.float32) + b1_ref[...]
    # exact (erf-based) GELU in f32, matching torch.nn.functional.gelu default
    h = 0.5 * h * (1.0 + jax.lax.erf(h * (1.0 / math.sqrt(2.0))))
    out = jnp.dot(h.astype(_MM_DTYPE), w2_ref[...].astype(_MM_DTYPE),
                  preferred_element_type=jnp.float32) + b2_ref[...]
    o_ref[...] = (out + x).astype(o_ref.dtype)        # residual = pre-LN input


def ln_mlp_residual(x2d, gamma, beta, w1, b1, w2, b2, *, tm=256):
    # TODO(synk): for very large E on v7x (64 MiB VMEM) split/tile the 4E axis
    # with a K-accumulator instead of keeping both MLP weights resident.
    M, E = x2d.shape
    F = w1.shape[1]
    tm = _tile(M, tm)
    return pl.pallas_call(
        _ln_mlp_residual_kernel,
        out_shape=jax.ShapeDtypeStruct((M, E), x2d.dtype),
        grid=(M // tm,),
        in_specs=[
            pl.BlockSpec((tm, E), lambda i: (i, 0)),
            pl.BlockSpec((1, E), lambda i: (0, 0)),
            pl.BlockSpec((1, E), lambda i: (0, 0)),
            pl.BlockSpec((E, F), lambda i: (0, 0)),
            pl.BlockSpec((1, F), lambda i: (0, 0)),
            pl.BlockSpec((F, E), lambda i: (0, 0)),
            pl.BlockSpec((1, E), lambda i: (0, 0)),
        ],
        out_specs=pl.BlockSpec((tm, E), lambda i: (i, 0)),
        compiler_params=pltpu.CompilerParams(
            dimension_semantics=("parallel",)),
        cost_estimate=pl.CostEstimate(
            flops=4 * M * E * F, transcendentals=M * F,
            bytes_accessed=4 * (2 * M * E + 2 * E * F)),
    )(x2d, gamma.reshape(1, E), beta.reshape(1, E),
      w1, b1.reshape(1, F), w2, b2.reshape(1, E))


# ------------------------------- attention -----------------------------------

def _attention_kernel(q_ref, k_ref, v_ref, o_ref, acc_ref, *, scale):
    qi = pl.program_id(1)
    ki = pl.program_id(2)
    tq = q_ref.shape[1]
    tk = k_ref.shape[1]

    @pl.when(ki == 0)
    def _():
        acc_ref[...] = jnp.zeros_like(acc_ref)

    q = q_ref[0].astype(_MM_DTYPE)          # (tq, H, D)
    k = k_ref[0].astype(_MM_DTYPE)          # (tk, H, D)
    v = v_ref[0].astype(_MM_DTYPE)          # (tk, H, D)

    # all-head scores for this (q, k) tile, stacked: (H, tq, tk)
    s = jnp.einsum('qhd,khd->hqk', q, k,
                   preferred_element_type=jnp.float32) * scale

    # causal mask (same quirk as reference: masked scores become exactly -1e4)
    row = qi * tq + jax.lax.broadcasted_iota(jnp.int32, (tq, tk), 0)
    col = ki * tk + jax.lax.broadcasted_iota(jnp.int32, (tq, tk), 1)
    s = jnp.where((col <= row)[None, :, :], s, -10000.0)

    # reference quirk: softmax over the HEAD axis (torch dim=1), not keys —
    # per-(q,k) normalization, so k-tiles are independent and just accumulate.
    m = jnp.max(s, axis=0, keepdims=True)
    e = jnp.exp(s - m)
    inv = pl.reciprocal(jnp.sum(e, axis=0, keepdims=True), approx=True)
    p = (e * inv).astype(_MM_DTYPE)         # (H, tq, tk)

    y = jnp.einsum('hqk,khd->qhd', p, v,
                   preferred_element_type=jnp.float32)      # (tq, H, D)
    acc_ref[...] += y.reshape(tq, -1)                        # lane-dense (tq, E)

    @pl.when(ki == pl.num_programs(2) - 1)
    def _():
        o_ref[0] = acc_ref[...].astype(o_ref.dtype)


def attention(q, k, v, *, scale, tq=256, tk=256):
    """q, k, v: (B, S, H, D) -> output (B, S, H*D), lane-dense."""
    B, S, H, D = q.shape
    E = H * D
    tq = _tile(S, tq)
    tk = _tile(S, tk)
    kern = functools.partial(_attention_kernel, scale=scale)
    q_spec = pl.BlockSpec((1, tq, H, D), lambda b, i, j: (b, i, 0, 0))
    kv_spec = pl.BlockSpec((1, tk, H, D), lambda b, i, j: (b, j, 0, 0))
    return pl.pallas_call(
        kern,
        out_shape=jax.ShapeDtypeStruct((B, S, E), q.dtype),
        grid=(B, S // tq, S // tk),
        in_specs=[q_spec, kv_spec, kv_spec],
        out_specs=pl.BlockSpec((1, tq, E), lambda b, i, j: (b, i, 0)),
        scratch_shapes=[pltpu.VMEM((tq, E), jnp.float32)],
        compiler_params=pltpu.CompilerParams(
            dimension_semantics=("parallel", "parallel", "arbitrary")),
    )(q, k, v)


# ---------------- fused final LayerNorm + vocab projection -------------------

def _ln_logits_kernel(x_ref, g_ref, b_ref, wte_ref, o_ref):
    x = x_ref[...].astype(jnp.float32)
    xn = _layernorm_f32(x, g_ref, b_ref).astype(_MM_DTYPE)
    # contract against wte's last dim (no materialized wte.T)
    o_ref[...] = jax.lax.dot_general(
        xn, wte_ref[...].astype(_MM_DTYPE),
        dimension_numbers=(((1,), (1,)), ((), ())),
        preferred_element_type=jnp.float32).astype(o_ref.dtype)


def ln_logits(x2d, gamma, beta, wte, *, tm=256, tv=1024):
    M, E = x2d.shape
    V = wte.shape[0]
    tm = _tile(M, tm)
    tv = _tile(V, tv)
    return pl.pallas_call(
        _ln_logits_kernel,
        out_shape=jax.ShapeDtypeStruct((M, V), x2d.dtype),
        grid=(M // tm, V // tv),
        in_specs=[
            pl.BlockSpec((tm, E), lambda i, j: (i, 0)),
            pl.BlockSpec((1, E), lambda i, j: (0, 0)),
            pl.BlockSpec((1, E), lambda i, j: (0, 0)),
            pl.BlockSpec((tv, E), lambda i, j: (j, 0)),
        ],
        out_specs=pl.BlockSpec((tm, tv), lambda i, j: (i, j)),
        compiler_params=pltpu.CompilerParams(
            dimension_semantics=("parallel", "parallel")),
        cost_estimate=pl.CostEstimate(
            flops=2 * M * E * V, transcendentals=0,
            bytes_accessed=4 * (M * E + V * E + M * V)),
    )(x2d, gamma.reshape(1, E), beta.reshape(1, E), wte)


# ------------------------------ parameters -----------------------------------

def init_params(key, cfg):
    E = cfg["embedding_size"]
    keys = iter(jax.random.split(key, 8 + 8 * cfg["layer_size"]))

    def nrm(shape, scale=0.02):
        return scale * jax.random.normal(next(keys), shape, dtype=jnp.float32)

    params = {
        "wte": nrm((cfg["vocab_size"], E)),
        "wpe": nrm((cfg["block_size"], E)),
        "ln_f_g": jnp.ones((E,), jnp.float32),
        "ln_f_b": jnp.zeros((E,), jnp.float32),
        "layers": [],
    }
    for _ in range(cfg["layer_size"]):
        params["layers"].append({
            "ln1_g": jnp.ones((E,), jnp.float32),
            "ln1_b": jnp.zeros((E,), jnp.float32),
            "w_qkv": nrm((E, 3 * E)), "b_qkv": jnp.zeros((3 * E,), jnp.float32),
            "w_proj": nrm((E, E)),    "b_proj": jnp.zeros((E,), jnp.float32),
            "ln2_g": jnp.ones((E,), jnp.float32),
            "ln2_b": jnp.zeros((E,), jnp.float32),
            "w_fc": nrm((E, 4 * E)),  "b_fc": jnp.zeros((4 * E,), jnp.float32),
            "w_out": nrm((4 * E, E)), "b_out": jnp.zeros((E,), jnp.float32),
        })
    return params


# -------------------------------- forward ------------------------------------

def gpt2_forward(params, tokens, cfg):
    # TODO(synk): kv_cache / use_cache incremental-decode path not implemented
    # (this reproduces forward(x, kv_cache=None, use_cache=False)).
    B, S = tokens.shape
    E = cfg["embedding_size"]
    H = cfg["num_attention_heads"]
    D = E // H
    M = B * S

    # token/position embedding gather stays in XLA; emb_drop = identity (eval)
    x = params["wte"][tokens] + params["wpe"][jnp.arange(S)][None, :, :]
    x2d = x.reshape(M, E)

    for lyr in params["layers"]:
        # LN1 fused into the QKV projection
        qkv = ln_linear(x2d, lyr["ln1_g"], lyr["ln1_b"],
                        lyr["w_qkv"], lyr["b_qkv"])            # (M, 3E)
        qkv = qkv.reshape(B, S, 3, H, D)
        q, k, v = qkv[:, :, 0], qkv[:, :, 1], qkv[:, :, 2]     # (B, S, H, D)

        # attention with head-axis softmax quirk; lane-dense (B, S, E) output
        y2d = attention(q, k, v, scale=1.0 / math.sqrt(D)).reshape(M, E)

        # output projection + residual add fused
        x2d = linear_residual(y2d, lyr["w_proj"], lyr["b_proj"], x2d)

        # LN2 + MLP (fc -> GELU -> proj) + residual fused
        x2d = ln_mlp_residual(x2d, lyr["ln2_g"], lyr["ln2_b"],
                              lyr["w_fc"], lyr["b_fc"],
                              lyr["w_out"], lyr["b_out"])

    # final LayerNorm fused into the vocab projection (logits)
    logits2d = ln_logits(x2d, params["ln_f_g"], params["ln_f_b"], params["wte"])
    return logits2d.reshape(B, S, cfg["vocab_size"])


# ---------------------------------- main --------------------------------------

if __name__ == "__main__":
    cfg = dict(
        vocab_size=64,
        block_size=16,
        embedding_size=32,
        num_attention_heads=4,
        layer_size=2,
        embedding_dropout=0.0,
        attention_dropout=0.0,
        residual_dropout=0.0,
    )
    key = jax.random.PRNGKey(0)
    pkey, tkey = jax.random.split(key)
    params = init_params(pkey, cfg)

    B, S = 2, 8
    tokens = jax.random.randint(tkey, (B, S), 0, cfg["vocab_size"], dtype=jnp.int32)

    fwd = jax.jit(lambda p, t: gpt2_forward(p, t, cfg))
    logits = fwd(params, tokens)
    jax.block_until_ready(logits)
    assert logits.shape == (B, S, cfg["vocab_size"])
    print("KERNEL_OK")
</pallas_src>

<mosaic_0001>
module attributes {stable_mosaic.version = 11 : i64} {
  func.func @_ln_linear_kernel(%arg0: i32, %arg1: i32, %arg2: memref<16x32xf32, #tpu.memory_space<vmem>>, %arg3: memref<1x32xf32, #tpu.memory_space<vmem>>, %arg4: memref<1x32xf32, #tpu.memory_space<vmem>>, %arg5: memref<32x96xf32, #tpu.memory_space<vmem>>, %arg6: memref<1x96xf32, #tpu.memory_space<vmem>>, %arg7: memref<16x96xf32, #tpu.memory_space<vmem>>) attributes {dimension_semantics = [#tpu.dimension_semantics<parallel>, #tpu.dimension_semantics<parallel>], iteration_bounds = array<i64: 1, 1>, scalar_prefetch = 0 : i64, scratch_operands = 0 : i64, tpu.core_type = #tpu.core_type<tc>, window_params = [{transform_indices = @transform_0, window_bounds = array<i64: 16, 32>}, {pipeline_mode = #tpu.pipeline_mode<synchronous>, transform_indices = @transform_1, window_bounds = array<i64: 1, 32>}, {pipeline_mode = #tpu.pipeline_mode<synchronous>, transform_indices = @transform_2, window_bounds = array<i64: 1, 32>}, {transform_indices = @transform_3, window_bounds = array<i64: 32, 96>}, {transform_indices = @transform_4, window_bounds = array<i64: 1, 96>}, {transform_indices = @transform_5, window_bounds = array<i64: 16, 96>}]} {
    %c0 = arith.constant 0 : index
    %c0_0 = arith.constant 0 : index
    %0 = vector.load %arg2[%c0, %c0_0] : memref<16x32xf32, #tpu.memory_space<vmem>>, vector<16x32xf32>
    %cst = arith.constant dense<0.000000e+00> : vector<16xf32>
    %1 = vector.multi_reduction <add>, %0, %cst [1] : vector<16x32xf32> to vector<16xf32>
    %2 = vector.shape_cast %1 : vector<16xf32> to vector<16x1xf32>
    %cst_1 = arith.constant 3.200000e+01 : f32
    %3 = vector.broadcast %cst_1 : f32 to vector<16x1xf32>
    %4 = arith.divf %2, %3 : vector<16x1xf32>
    %5 = vector.broadcast %4 : vector<16x1xf32> to vector<16x32xf32>
    %6 = arith.subf %0, %5 : vector<16x32xf32>
    %7 = arith.mulf %6, %6 : vector<16x32xf32>
    %cst_2 = arith.constant dense<0.000000e+00> : vector<16xf32>
    %8 = vector.multi_reduction <add>, %7, %cst_2 [1] : vector<16x32xf32> to vector<16xf32>
    %9 = vector.shape_cast %8 : vector<16xf32> to vector<16x1xf32>
    %cst_3 = arith.constant 3.200000e+01 : f32
    %10 = vector.broadcast %cst_3 : f32 to vector<16x1xf32>
    %11 = arith.divf %9, %10 : vector<16x1xf32>
    %12 = vector.broadcast %4 : vector<16x1xf32> to vector<16x32xf32>
    %13 = arith.subf %0, %12 : vector<16x32xf32>
    %cst_4 = arith.constant 9.99999974E-6 : f32
    %14 = vector.broadcast %cst_4 : f32 to vector<16x1xf32>
    %15 = arith.addf %11, %14 : vector<16x1xf32>
    %16 = math.rsqrt %15 : vector<16x1xf32>
    %17 = vector.broadcast %16 : vector<16x1xf32> to vector<16x32xf32>
    %18 = arith.mulf %13, %17 : vector<16x32xf32>
    %c0_5 = arith.constant 0 : index
    %c0_6 = arith.constant 0 : index
    %19 = vector.load %arg3[%c0_5, %c0_6] : memref<1x32xf32, #tpu.memory_space<vmem>>, vector<1x32xf32>
    %20 = vector.broadcast %19 : vector<1x32xf32> to vector<16x32xf32>
    %21 = arith.mulf %18, %20 : vector<16x32xf32>
    %c0_7 = arith.constant 0 : index
    %c0_8 = arith.constant 0 : index
    %22 = vector.load %arg4[%c0_7, %c0_8] : memref<1x32xf32, #tpu.memory_space<vmem>>, vector<1x32xf32>
    %23 = vector.broadcast %22 : vector<1x32xf32> to vector<16x32xf32>
    %24 = arith.addf %21, %23 : vector<16x32xf32>
    %25 = arith.truncf %24 : vector<16x32xf32> to vector<16x32xbf16>
    %c0_9 = arith.constant 0 : index
    %c0_10 = arith.constant 0 : index
    %26 = vector.load %arg5[%c0_9, %c0_10] : memref<32x96xf32, #tpu.memory_space<vmem>>, vector<32x96xf32>
    %27 = arith.truncf %26 : vector<32x96xf32> to vector<32x96xbf16>
    %cst_11 = arith.constant dense<0.000000e+00> : vector<16x96xf32>
    %28 = tpu.matmul %25, %27, %cst_11 {dimension_numbers = #tpu.dot_dimension_numbers<[1], [0], [0], [1], [0, 0, 1, 1], [], []>} : vector<16x32xbf16>, vector<32x96xbf16>, vector<16x96xf32> -> vector<16x96xf32>
    %c0_12 = arith.constant 0 : index
    %c0_13 = arith.constant 0 : index
    %29 = vector.load %arg6[%c0_12, %c0_13] : memref<1x96xf32, #tpu.memory_space<vmem>>, vector<1x96xf32>
    %30 = vector.broadcast %29 : vector<1x96xf32> to vector<16x96xf32>
    %31 = arith.addf %28, %30 : vector<16x96xf32>
    %c0_14 = arith.constant 0 : index
    %c0_15 = arith.constant 0 : index
    %32 = vector.load %arg7[%c0_14, %c0_15] : memref<16x96xf32, #tpu.memory_space<vmem>>, vector<16x96xf32>
    tpu.vector_store %arg7[%c0_14, %c0_15], %31 {strides = array<i32>} : memref<16x96xf32, #tpu.memory_space<vmem>>, vector<16x96xf32>,
    return
  }
  func.func @transform_0(%arg0: i32, %arg1: i32) -> (i32, i32) {
    %c0_i32 = arith.constant 0 : i32
    %c0_i32_0 = arith.constant 0 : i32
    return %arg0, %c0_i32 : i32, i32
  }
  func.func @transform_1(%arg0: i32, %arg1: i32) -> (i32, i32) {
    %c0_i32 = arith.constant 0 : i32
    %c0_i32_0 = arith.constant 0 : i32
    %c0_i32_1 = arith.constant 0 : i32
    return %c0_i32, %c0_i32_0 : i32, i32
  }
  func.func @transform_2(%arg0: i32, %arg1: i32) -> (i32, i32) {
    %c0_i32 = arith.constant 0 : i32
    %c0_i32_0 = arith.constant 0 : i32
    %c0_i32_1 = arith.constant 0 : i32
    return %c0_i32, %c0_i32_0 : i32, i32
  }
  func.func @transform_3(%arg0: i32, %arg1: i32) -> (i32, i32) {
    %c0_i32 = arith.constant 0 : i32
    %c0_i32_0 = arith.constant 0 : i32
    return %c0_i32, %arg1 : i32, i32
  }
  func.func @transform_4(%arg0: i32, %arg1: i32) -> (i32, i32) {
    %c0_i32 = arith.constant 0 : i32
    %c0_i32_0 = arith.constant 0 : i32
    return %c0_i32, %arg1 : i32, i32
  }
  func.func @transform_5(%arg0: i32, %arg1: i32) -> (i32, i32) {
    %c0_i32 = arith.constant 0 : i32
    return %arg0, %arg1 : i32, i32
  }
}

module attributes {stable_mosaic.version = 11 : i64} {
  func.func @_attention_kernel(%arg0: i32, %arg1: i32, %arg2: i32, %arg3: memref<1x8x4x8xf32, #tpu.memory_space<vmem>>, %arg4: memref<1x8x4x8xf32, #tpu.memory_space<vmem>>, %arg5: memref<1x8x4x8xf32, #tpu.memory_space<vmem>>, %arg6: memref<1x8x32xf32, #tpu.memory_space<vmem>>, %arg7: memref<8x32xf32, #tpu.memory_space<vmem>>) attributes {dimension_semantics = [#tpu.dimension_semantics<parallel>, #tpu.dimension_semantics<parallel>, #tpu.dimension_semantics<arbitrary>], iteration_bounds = array<i64: 2, 1, 1>, scalar_prefetch = 0 : i64, scratch_operands = 1 : i64, tpu.core_type = #tpu.core_type<tc>, window_params = [{transform_indices = @transform_0, window_bounds = array<i64: 1, 8, 4, 8>}, {transform_indices = @transform_1, window_bounds = array<i64: 1, 8, 4, 8>}, {transform_indices = @transform_2, window_bounds = array<i64: 1, 8, 4, 8>}, {transform_indices = @transform_3, window_bounds = array<i64: 1, 8, 32>}]} {
    %c0_i32 = arith.constant 0 : i32
    %0 = arith.cmpi eq, %arg2, %c0_i32 : i32
    %1 = arith.extui %0 : i1 to i32
    %c0_i32_0 = arith.constant 0 : i32
    %2 = arith.cmpi ne, %1, %c0_i32_0 : i32
    scf.if %2 {
      %cst_24 = arith.constant 0.000000e+00 : f32
      %49 = vector.broadcast %cst_24 : f32 to vector<8x32xf32>
      %c0_25 = arith.constant 0 : index
      %c0_26 = arith.constant 0 : index
      %50 = vector.load %arg7[%c0_25, %c0_26] : memref<8x32xf32, #tpu.memory_space<vmem>>, vector<8x32xf32>
      tpu.vector_store %arg7[%c0_25, %c0_26], %49 {strides = array<i32>} : memref<8x32xf32, #tpu.memory_space<vmem>>, vector<8x32xf32>,
    } else {
    }
    %c0 = arith.constant 0 : index
    %c0_1 = arith.constant 0 : index
    %c0_2 = arith.constant 0 : index
    %c0_3 = arith.constant 0 : index
    %3 = vector.load %arg3[%c0, %c0_1, %c0_2, %c0_3] : memref<1x8x4x8xf32, #tpu.memory_space<vmem>>, vector<1x8x4x8xf32>
    %4 = vector.shape_cast %3 : vector<1x8x4x8xf32> to vector<8x4x8xf32>
    %5 = arith.truncf %4 : vector<8x4x8xf32> to vector<8x4x8xbf16>
    %c0_4 = arith.constant 0 : index
    %c0_5 = arith.constant 0 : index
    %c0_6 = arith.constant 0 : index
    %c0_7 = arith.constant 0 : index
    %6 = vector.load %arg4[%c0_4, %c0_5, %c0_6, %c0_7] : memref<1x8x4x8xf32, #tpu.memory_space<vmem>>, vector<1x8x4x8xf32>
    %7 = vector.shape_cast %6 : vector<1x8x4x8xf32> to vector<8x4x8xf32>
    %8 = arith.truncf %7 : vector<8x4x8xf32> to vector<8x4x8xbf16>
    %c0_8 = arith.constant 0 : index
    %c0_9 = arith.constant 0 : index
    %c0_10 = arith.constant 0 : index
    %c0_11 = arith.constant 0 : index
    %9 = vector.load %arg5[%c0_8, %c0_9, %c0_10, %c0_11] : memref<1x8x4x8xf32, #tpu.memory_space<vmem>>, vector<1x8x4x8xf32>
    %10 = vector.shape_cast %9 : vector<1x8x4x8xf32> to vector<8x4x8xf32>
    %11 = arith.truncf %10 : vector<8x4x8xf32> to vector<8x4x8xbf16>
    "tpu.trace_start"() <{level = 10 : i32, message = "qhd,khd->hqk"}> : () -> ()
    %cst = arith.constant dense<0.000000e+00> : vector<4x8x8xf32>
    %12 = tpu.matmul %5, %8, %cst {dimension_numbers = #tpu.dot_dimension_numbers<[2], [2], [0], [0], [0, 1, 0, 0, 1, 0], [1], [1]>} : vector<8x4x8xbf16>, vector<8x4x8xbf16>, vector<4x8x8xf32> -> vector<4x8x8xf32>
    "tpu.trace_stop"() : () -> ()
    %cst_12 = arith.constant 0.353553385 : f32
    %13 = vector.broadcast %cst_12 : f32 to vector<4x8x8xf32>
    %14 = arith.mulf %12, %13 : vector<4x8x8xf32>
    %c8_i32 = arith.constant 8 : i32
    %15 = arith.muli %arg1, %c8_i32 : i32
    %16 = tpu.iota {dimensions = array<i32: 0>} : vector<8x8xi32>
    %17 = vector.broadcast %15 : i32 to vector<8x8xi32>
    %18 = arith.addi %17, %16 : vector<8x8xi32>
    %c8_i32_13 = arith.constant 8 : i32
    %19 = arith.muli %arg2, %c8_i32_13 : i32
    %20 = tpu.iota {dimensions = array<i32: 1>} : vector<8x8xi32>
    %21 = vector.broadcast %19 : i32 to vector<8x8xi32>
    %22 = arith.addi %21, %20 : vector<8x8xi32>
    %23 = arith.cmpi sle, %22, %18 : vector<8x8xi32>
    %24 = vector.shape_cast %23 : vector<8x8xi1> to vector<1x8x8xi1>
    %cst_14 = arith.constant -1.000000e+04 : f32
    %25 = vector.shape_cast %24 : vector<1x8x8xi1> to vector<1x8x8xi1>
    %26 = vector.broadcast %25 : vector<1x8x8xi1> to vector<4x8x8xi1>
    %27 = vector.broadcast %cst_14 : f32 to vector<4x8x8xf32>
    %28 = arith.select %26, %14, %27 : vector<4x8x8xi1>, vector<4x8x8xf32>
    %cst_15 = arith.constant dense<0xFF800000> : vector<8x8xf32>
    %29 = vector.multi_reduction <maximumf>, %28, %cst_15 [0] : vector<4x8x8xf32> to vector<8x8xf32>
    %30 = vector.shape_cast %29 : vector<8x8xf32> to vector<1x8x8xf32>
    %31 = vector.broadcast %30 : vector<1x8x8xf32> to vector<4x8x8xf32>
    %32 = arith.subf %28, %31 : vector<4x8x8xf32>
    %33 = math.exp %32 : vector<4x8x8xf32>
    %cst_16 = arith.constant dense<0.000000e+00> : vector<8x8xf32>
    %34 = vector.multi_reduction <add>, %33, %cst_16 [0] : vector<4x8x8xf32> to vector<8x8xf32>
    %35 = vector.shape_cast %34 : vector<8x8xf32> to vector<1x8x8xf32>
    %36 = tpu.reciprocal %35 {approx = true} : vector<1x8x8xf32> -> vector<1x8x8xf32>
    %37 = vector.broadcast %36 : vector<1x8x8xf32> to vector<4x8x8xf32>
    %38 = arith.mulf %33, %37 : vector<4x8x8xf32>
    %39 = arith.truncf %38 : vector<4x8x8xf32> to vector<4x8x8xbf16>
    "tpu.trace_start"() <{level = 10 : i32, message = "hqk,khd->qhd"}> : () -> ()
    %cst_17 = arith.constant dense<0.000000e+00> : vector<4x8x8xf32>
    %40 = tpu.matmul %11, %39, %cst_17 {dimension_numbers = #tpu.dot_dimension_numbers<[0], [2], [2], [1], [0, 1, 0, 2, 1, 1], [1], [0]>} : vector<8x4x8xbf16>, vector<4x8x8xbf16>, vector<4x8x8xf32> -> vector<4x8x8xf32>
    %41 = tpu.transpose %40, [2, 0, 1] : vector<4x8x8xf32> -> vector<8x4x8xf32>
    "tpu.trace_stop"() : () -> ()
    %c0_18 = arith.constant 0 : index
    %c0_19 = arith.constant 0 : index
    %42 = vector.load %arg7[%c0_18, %c0_19] : memref<8x32xf32, #tpu.memory_space<vmem>>, vector<8x32xf32>
    %43 = vector.shape_cast %41 : vector<8x4x8xf32> to vector<8x32xf32>
    %44 = arith.addf %42, %43 : vector<8x32xf32>
    %c0_20 = arith.constant 0 : index
    %c0_21 = arith.constant 0 : index
    %45 = vector.load %arg7[%c0_20, %c0_21] : memref<8x32xf32, #tpu.memory_space<vmem>>, vector<8x32xf32>
    tpu.vector_store %arg7[%c0_20, %c0_21], %44 {strides = array<i32>} : memref<8x32xf32, #tpu.memory_space<vmem>>, vector<8x32xf32>,
    %c0_i32_22 = arith.constant 0 : i32
    %46 = arith.cmpi eq, %arg2, %c0_i32_22 : i32
    %47 = arith.extui %46 : i1 to i32
    %c0_i32_23 = arith.constant 0 : i32
    %48 = arith.cmpi ne, %47, %c0_i32_23 : i32
    scf.if %48 {
      %c0_24 = arith.constant 0 : index
      %c0_25 = arith.constant 0 : index
      %49 = vector.load %arg7[%c0_24, %c0_25] : memref<8x32xf32, #tpu.memory_space<vmem>>, vector<8x32xf32>
      %c0_26 = arith.constant 0 : index
      %c0_27 = arith.constant 0 : index
      %c0_28 = arith.constant 0 : index
      %50 = vector.load %arg6[%c0_26, %c0_27, %c0_28] : memref<1x8x32xf32, #tpu.memory_space<vmem>>, vector<1x8x32xf32>
      %51 = vector.shape_cast %50 : vector<1x8x32xf32> to vector<8x32xf32>
      %52 = vector.shape_cast %49 : vector<8x32xf32> to vector<1x8x32xf32>
      tpu.vector_store %arg6[%c0_26, %c0_27, %c0_28], %52 {strides = array<i32>} : memref<1x8x32xf32, #tpu.memory_space<vmem>>, vector<1x8x32xf32>,
    } else {
    }
    return
  }
  func.func @transform_0(%arg0: i32, %arg1: i32, %arg2: i32) -> (i32, i32, i32, i32) {
    %c0_i32 = arith.constant 0 : i32
    %c0_i32_0 = arith.constant 0 : i32
    %c0_i32_1 = arith.constant 0 : i32
    return %arg0, %arg1, %c0_i32, %c0_i32_0 : i32, i32, i32, i32
  }
  func.func @transform_1(%arg0: i32, %arg1: i32, %arg2: i32) -> (i32, i32, i32, i32) {
    %c0_i32 = arith.constant 0 : i32
    %c0_i32_0 = arith.constant 0 : i32
    %c0_i32_1 = arith.constant 0 : i32
    return %arg0, %arg2, %c0_i32, %c0_i32_0 : i32, i32, i32, i32
  }
  func.func @transform_2(%arg0: i32, %arg1: i32, %arg2: i32) -> (i32, i32, i32, i32) {
    %c0_i32 = arith.constant 0 : i32
    %c0_i32_0 = arith.constant 0 : i32
    %c0_i32_1 = arith.constant 0 : i32
    return %arg0, %arg2, %c0_i32, %c0_i32_0 : i32, i32, i32, i32
  }
  func.func @transform_3(%arg0: i32, %arg1: i32, %arg2: i32) -> (i32, i32, i32) {
    %c0_i32 = arith.constant 0 : i32
    %c0_i32_0 = arith.constant 0 : i32
    return %arg0, %arg1, %c0_i32 : i32, i32, i32
  }
}

module attributes {stable_mosaic.version = 11 : i64} {
  func.func @_linear_residual_kernel(%arg0: i32, %arg1: i32, %arg2: memref<16x32xf32, #tpu.memory_space<vmem>>, %arg3: memref<32x32xf32, #tpu.memory_space<vmem>>, %arg4: memref<1x32xf32, #tpu.memory_space<vmem>>, %arg5: memref<16x32xf32, #tpu.memory_space<vmem>>, %arg6: memref<16x32xf32, #tpu.memory_space<vmem>>) attributes {dimension_semantics = [#tpu.dimension_semantics<parallel>, #tpu.dimension_semantics<parallel>], iteration_bounds = array<i64: 1, 1>, scalar_prefetch = 0 : i64, scratch_operands = 0 : i64, tpu.core_type = #tpu.core_type<tc>, window_params = [{transform_indices = @transform_0, window_bounds = array<i64: 16, 32>}, {transform_indices = @transform_1, window_bounds = array<i64: 32, 32>}, {transform_indices = @transform_2, window_bounds = array<i64: 1, 32>}, {transform_indices = @transform_3, window_bounds = array<i64: 16, 32>}, {transform_indices = @transform_4, window_bounds = array<i64: 16, 32>}]} {
    %c0 = arith.constant 0 : index
    %c0_0 = arith.constant 0 : index
    %0 = vector.load %arg2[%c0, %c0_0] : memref<16x32xf32, #tpu.memory_space<vmem>>, vector<16x32xf32>
    %1 = arith.truncf %0 : vector<16x32xf32> to vector<16x32xbf16>
    %c0_1 = arith.constant 0 : index
    %c0_2 = arith.constant 0 : index
    %2 = vector.load %arg3[%c0_1, %c0_2] : memref<32x32xf32, #tpu.memory_space<vmem>>, vector<32x32xf32>
    %3 = arith.truncf %2 : vector<32x32xf32> to vector<32x32xbf16>
    %cst = arith.constant dense<0.000000e+00> : vector<16x32xf32>
    %4 = tpu.matmul %1, %3, %cst {dimension_numbers = #tpu.dot_dimension_numbers<[1], [0], [0], [1], [0, 0, 1, 1], [], []>} : vector<16x32xbf16>, vector<32x32xbf16>, vector<16x32xf32> -> vector<16x32xf32>
    %c0_3 = arith.constant 0 : index
    %c0_4 = arith.constant 0 : index
    %5 = vector.load %arg4[%c0_3, %c0_4] : memref<1x32xf32, #tpu.memory_space<vmem>>, vector<1x32xf32>
    %6 = vector.broadcast %5 : vector<1x32xf32> to vector<16x32xf32>
    %7 = arith.addf %4, %6 : vector<16x32xf32>
    %c0_5 = arith.constant 0 : index
    %c0_6 = arith.constant 0 : index
    %8 = vector.load %arg5[%c0_5, %c0_6] : memref<16x32xf32, #tpu.memory_space<vmem>>, vector<16x32xf32>
    %9 = arith.addf %7, %8 : vector<16x32xf32>
    %c0_7 = arith.constant 0 : index
    %c0_8 = arith.constant 0 : index
    %10 = vector.load %arg6[%c0_7, %c0_8] : memref<16x32xf32, #tpu.memory_space<vmem>>, vector<16x32xf32>
    tpu.vector_store %arg6[%c0_7, %c0_8], %9 {strides = array<i32>} : memref<16x32xf32, #tpu.memory_space<vmem>>, vector<16x32xf32>,
    return
  }
  func.func @transform_0(%arg0: i32, %arg1: i32) -> (i32, i32) {
    %c0_i32 = arith.constant 0 : i32
    %c0_i32_0 = arith.constant 0 : i32
    return %arg0, %c0_i32 : i32, i32
  }
  func.func @transform_1(%arg0: i32, %arg1: i32) -> (i32, i32) {
    %c0_i32 = arith.constant 0 : i32
    %c0_i32_0 = arith.constant 0 : i32
    return %c0_i32, %arg1 : i32, i32
  }
  func.func @transform_2(%arg0: i32, %arg1: i32) -> (i32, i32) {
    %c0_i32 = arith.constant 0 : i32
    %c0_i32_0 = arith.constant 0 : i32
    return %c0_i32, %arg1 : i32, i32
  }
  func.func @transform_3(%arg0: i32, %arg1: i32) -> (i32, i32) {
    %c0_i32 = arith.constant 0 : i32
    return %arg0, %arg1 : i32, i32
  }
  func.func @transform_4(%arg0: i32, %arg1: i32) -> (i32, i32) {
    %c0_i32 = arith.constant 0 : i32
    return %arg0, %arg1 : i32, i32
  }
}

module attributes {stable_mosaic.version = 11 : i64} {
  func.func @_ln_mlp_residual_kernel(%arg0: i32, %arg1: memref<16x32xf32, #tpu.memory_space<vmem>>, %arg2: memref<1x32xf32, #tpu.memory_space<vmem>>, %arg3: memref<1x32xf32, #tpu.memory_space<vmem>>, %arg4: memref<32x128xf32, #tpu.memory_space<vmem>>, %arg5: memref<1x128xf32, #tpu.memory_space<vmem>>, %arg6: memref<128x32xf32, #tpu.memory_space<vmem>>, %arg7: memref<1x32xf32, #tpu.memory_space<vmem>>, %arg8: memref<16x32xf32, #tpu.memory_space<vmem>>) attributes {dimension_semantics = [#tpu.dimension_semantics<parallel>], iteration_bounds = array<i64: 1>, scalar_prefetch = 0 : i64, scratch_operands = 0 : i64, tpu.core_type = #tpu.core_type<tc>, window_params = [{transform_indices = @transform_0, window_bounds = array<i64: 16, 32>}, {pipeline_mode = #tpu.pipeline_mode<synchronous>, transform_indices = @transform_1, window_bounds = array<i64: 1, 32>}, {pipeline_mode = #tpu.pipeline_mode<synchronous>, transform_indices = @transform_2, window_bounds = array<i64: 1, 32>}, {pipeline_mode = #tpu.pipeline_mode<synchronous>, transform_indices = @transform_3, window_bounds = array<i64: 32, 128>}, {pipeline_mode = #tpu.pipeline_mode<synchronous>, transform_indices = @transform_4, window_bounds = array<i64: 1, 128>}, {pipeline_mode = #tpu.pipeline_mode<synchronous>, transform_indices = @transform_5, window_bounds = array<i64: 128, 32>}, {pipeline_mode = #tpu.pipeline_mode<synchronous>, transform_indices = @transform_6, window_bounds = array<i64: 1, 32>}, {transform_indices = @transform_7, window_bounds = array<i64: 16, 32>}]} {
    %c0 = arith.constant 0 : index
    %c0_0 = arith.constant 0 : index
    %0 = vector.load %arg1[%c0, %c0_0] : memref<16x32xf32, #tpu.memory_space<vmem>>, vector<16x32xf32>
    %cst = arith.constant dense<0.000000e+00> : vector<16xf32>
    %1 = vector.multi_reduction <add>, %0, %cst [1] : vector<16x32xf32> to vector<16xf32>
    %2 = vector.shape_cast %1 : vector<16xf32> to vector<16x1xf32>
    %cst_1 = arith.constant 3.200000e+01 : f32
    %3 = vector.broadcast %cst_1 : f32 to vector<16x1xf32>
    %4 = arith.divf %2, %3 : vector<16x1xf32>
    %5 = vector.broadcast %4 : vector<16x1xf32> to vector<16x32xf32>
    %6 = arith.subf %0, %5 : vector<16x32xf32>
    %7 = arith.mulf %6, %6 : vector<16x32xf32>
    %cst_2 = arith.constant dense<0.000000e+00> : vector<16xf32>
    %8 = vector.multi_reduction <add>, %7, %cst_2 [1] : vector<16x32xf32> to vector<16xf32>
    %9 = vector.shape_cast %8 : vector<16xf32> to vector<16x1xf32>
    %cst_3 = arith.constant 3.200000e+01 : f32
    %10 = vector.broadcast %cst_3 : f32 to vector<16x1xf32>
    %11 = arith.divf %9, %10 : vector<16x1xf32>
    %12 = vector.broadcast %4 : vector<16x1xf32> to vector<16x32xf32>
    %13 = arith.subf %0, %12 : vector<16x32xf32>
    %cst_4 = arith.constant 9.99999974E-6 : f32
    %14 = vector.broadcast %cst_4 : f32 to vector<16x1xf32>
    %15 = arith.addf %11, %14 : vector<16x1xf32>
    %16 = math.rsqrt %15 : vector<16x1xf32>
    %17 = vector.broadcast %16 : vector<16x1xf32> to vector<16x32xf32>
    %18 = arith.mulf %13, %17 : vector<16x32xf32>
    %c0_5 = arith.constant 0 : index
    %c0_6 = arith.constant 0 : index
    %19 = vector.load %arg2[%c0_5, %c0_6] : memref<1x32xf32, #tpu.memory_space<vmem>>, vector<1x32xf32>
    %20 = vector.broadcast %19 : vector<1x32xf32> to vector<16x32xf32>
    %21 = arith.mulf %18, %20 : vector<16x32xf32>
    %c0_7 = arith.constant 0 : index
    %c0_8 = arith.constant 0 : index
    %22 = vector.load %arg3[%c0_7, %c0_8] : memref<1x32xf32, #tpu.memory_space<vmem>>, vector<1x32xf32>
    %23 = vector.broadcast %22 : vector<1x32xf32> to vector<16x32xf32>
    %24 = arith.addf %21, %23 : vector<16x32xf32>
    %25 = arith.truncf %24 : vector<16x32xf32> to vector<16x32xbf16>
    %c0_9 = arith.constant 0 : index
    %c0_10 = arith.constant 0 : index
    %26 = vector.load %arg4[%c0_9, %c0_10] : memref<32x128xf32, #tpu.memory_space<vmem>>, vector<32x128xf32>
    %27 = arith.truncf %26 : vector<32x128xf32> to vector<32x128xbf16>
    %cst_11 = arith.constant dense<0.000000e+00> : vector<16x128xf32>
    %28 = tpu.matmul %25, %27, %cst_11 {dimension_numbers = #tpu.dot_dimension_numbers<[1], [0], [0], [1], [0, 0, 1, 1], [], []>} : vector<16x32xbf16>, vector<32x128xbf16>, vector<16x128xf32> -> vector<16x128xf32>
    %c0_12 = arith.constant 0 : index
    %c0_13 = arith.constant 0 : index
    %29 = vector.load %arg5[%c0_12, %c0_13] : memref<1x128xf32, #tpu.memory_space<vmem>>, vector<1x128xf32>
    %30 = vector.broadcast %29 : vector<1x128xf32> to vector<16x128xf32>
    %31 = arith.addf %28, %30 : vector<16x128xf32>
    %cst_14 = arith.constant 5.000000e-01 : f32
    %32 = vector.broadcast %cst_14 : f32 to vector<16x128xf32>
    %33 = arith.mulf %32, %31 : vector<16x128xf32>
    %cst_15 = arith.constant 0.707106769 : f32
    %34 = vector.broadcast %cst_15 : f32 to vector<16x128xf32>
    %35 = arith.mulf %31, %34 : vector<16x128xf32>
    %36 = math.erf %35 : vector<16x128xf32>
    %cst_16 = arith.constant 1.000000e+00 : f32
    %37 = vector.broadcast %cst_16 : f32 to vector<16x128xf32>
    %38 = arith.addf %37, %36 : vector<16x128xf32>
    %39 = arith.mulf %33, %38 : vector<16x128xf32>
    %40 = arith.truncf %39 : vector<16x128xf32> to vector<16x128xbf16>
    %c0_17 = arith.constant 0 : index
    %c0_18 = arith.constant 0 : index
    %41 = vector.load %arg6[%c0_17, %c0_18] : memref<128x32xf32, #tpu.memory_space<vmem>>, vector<128x32xf32>
    %42 = arith.truncf %41 : vector<128x32xf32> to vector<128x32xbf16>
    %cst_19 = arith.constant dense<0.000000e+00> : vector<16x32xf32>
    %43 = tpu.matmul %40, %42, %cst_19 {dimension_numbers = #tpu.dot_dimension_numbers<[1], [0], [0], [1], [0, 0, 1, 1], [], []>} : vector<16x128xbf16>, vector<128x32xbf16>, vector<16x32xf32> -> vector<16x32xf32>
    %c0_20 = arith.constant 0 : index
    %c0_21 = arith.constant 0 : index
    %44 = vector.load %arg7[%c0_20, %c0_21] : memref<1x32xf32, #tpu.memory_space<vmem>>, vector<1x32xf32>
    %45 = vector.broadcast %44 : vector<1x32xf32> to vector<16x32xf32>
    %46 = arith.addf %43, %45 : vector<16x32xf32>
    %47 = arith.addf %46, %0 : vector<16x32xf32>
    %c0_22 = arith.constant 0 : index
    %c0_23 = arith.constant 0 : index
    %48 = vector.load %arg8[%c0_22, %c0_23] : memref<16x32xf32, #tpu.memory_space<vmem>>, vector<16x32xf32>
    tpu.vector_store %arg8[%c0_22, %c0_23], %47 {strides = array<i32>} : memref<16x32xf32, #tpu.memory_space<vmem>>, vector<16x32xf32>,
    return
  }
  func.func @transform_0(%arg0: i32) -> (i32, i32) {
    %c0_i32 = arith.constant 0 : i32
    %c0_i32_0 = arith.constant 0 : i32
    return %arg0, %c0_i32 : i32, i32
  }
  func.func @transform_1(%arg0: i32) -> (i32, i32) {
    %c0_i32 = arith.constant 0 : i32
    %c0_i32_0 = arith.constant 0 : i32
    %c0_i32_1 = arith.constant 0 : i32
    return %c0_i32, %c0_i32_0 : i32, i32
  }
  func.func @transform_2(%arg0: i32) -> (i32, i32) {
    %c0_i32 = arith.constant 0 : i32
    %c0_i32_0 = arith.constant 0 : i32
    %c0_i32_1 = arith.constant 0 : i32
    return %c0_i32, %c0_i32_0 : i32, i32
  }
  func.func @transform_3(%arg0: i32) -> (i32, i32) {
    %c0_i32 = arith.constant 0 : i32
    %c0_i32_0 = arith.constant 0 : i32
    %c0_i32_1 = arith.constant 0 : i32
    return %c0_i32, %c0_i32_0 : i32, i32
  }
  func.func @transform_4(%arg0: i32) -> (i32, i32) {
    %c0_i32 = arith.constant 0 : i32
    %c0_i32_0 = arith.constant 0 : i32
    %c0_i32_1 = arith.constant 0 : i32
    return %c0_i32, %c0_i32_0 : i32, i32
  }
  func.func @transform_5(%arg0: i32) -> (i32, i32) {
    %c0_i32 = arith.constant 0 : i32
    %c0_i32_0 = arith.constant 0 : i32
    %c0_i32_1 = arith.constant 0 : i32
    return %c0_i32, %c0_i32_0 : i32, i32
  }
  func.func @transform_6(%arg0: i32) -> (i32, i32) {
    %c0_i32 = arith.constant 0 : i32
    %c0_i32_0 = arith.constant 0 : i32
    %c0_i32_1 = arith.constant 0 : i32
    return %c0_i32, %c0_i32_0 : i32, i32
  }
  func.func @transform_7(%arg0: i32) -> (i32, i32) {
    %c0_i32 = arith.constant 0 : i32
    %c0_i32_0 = arith.constant 0 : i32
    return %arg0, %c0_i32 : i32, i32
  }
}

module attributes {stable_mosaic.version = 11 : i64} {
  func.func @_ln_logits_kernel(%arg0: i32, %arg1: i32, %arg2: memref<16x32xf32, #tpu.memory_space<vmem>>, %arg3: memref<1x32xf32, #tpu.memory_space<vmem>>, %arg4: memref<1x32xf32, #tpu.memory_space<vmem>>, %arg5: memref<64x32xf32, #tpu.memory_space<vmem>>, %arg6: memref<16x64xf32, #tpu.memory_space<vmem>>) attributes {dimension_semantics = [#tpu.dimension_semantics<parallel>, #tpu.dimension_semantics<parallel>], iteration_bounds = array<i64: 1, 1>, scalar_prefetch = 0 : i64, scratch_operands = 0 : i64, tpu.core_type = #tpu.core_type<tc>, window_params = [{transform_indices = @transform_0, window_bounds = array<i64: 16, 32>}, {pipeline_mode = #tpu.pipeline_mode<synchronous>, transform_indices = @transform_1, window_bounds = array<i64: 1, 32>}, {pipeline_mode = #tpu.pipeline_mode<synchronous>, transform_indices = @transform_2, window_bounds = array<i64: 1, 32>}, {transform_indices = @transform_3, window_bounds = array<i64: 64, 32>}, {transform_indices = @transform_4, window_bounds = array<i64: 16, 64>}]} {
    %c0 = arith.constant 0 : index
    %c0_0 = arith.constant 0 : index
    %0 = vector.load %arg2[%c0, %c0_0] : memref<16x32xf32, #tpu.memory_space<vmem>>, vector<16x32xf32>
    %cst = arith.constant dense<0.000000e+00> : vector<16xf32>
    %1 = vector.multi_reduction <add>, %0, %cst [1] : vector<16x32xf32> to vector<16xf32>
    %2 = vector.shape_cast %1 : vector<16xf32> to vector<16x1xf32>
    %cst_1 = arith.constant 3.200000e+01 : f32
    %3 = vector.broadcast %cst_1 : f32 to vector<16x1xf32>
    %4 = arith.divf %2, %3 : vector<16x1xf32>
    %5 = vector.broadcast %4 : vector<16x1xf32> to vector<16x32xf32>
    %6 = arith.subf %0, %5 : vector<16x32xf32>
    %7 = arith.mulf %6, %6 : vector<16x32xf32>
    %cst_2 = arith.constant dense<0.000000e+00> : vector<16xf32>
    %8 = vector.multi_reduction <add>, %7, %cst_2 [1] : vector<16x32xf32> to vector<16xf32>
    %9 = vector.shape_cast %8 : vector<16xf32> to vector<16x1xf32>
    %cst_3 = arith.constant 3.200000e+01 : f32
    %10 = vector.broadcast %cst_3 : f32 to vector<16x1xf32>
    %11 = arith.divf %9, %10 : vector<16x1xf32>
    %12 = vector.broadcast %4 : vector<16x1xf32> to vector<16x32xf32>
    %13 = arith.subf %0, %12 : vector<16x32xf32>
    %cst_4 = arith.constant 9.99999974E-6 : f32
    %14 = vector.broadcast %cst_4 : f32 to vector<16x1xf32>
    %15 = arith.addf %11, %14 : vector<16x1xf32>
    %16 = math.rsqrt %15 : vector<16x1xf32>
    %17 = vector.broadcast %16 : vector<16x1xf32> to vector<16x32xf32>
    %18 = arith.mulf %13, %17 : vector<16x32xf32>
    %c0_5 = arith.constant 0 : index
    %c0_6 = arith.constant 0 : index
    %19 = vector.load %arg3[%c0_5, %c0_6] : memref<1x32xf32, #tpu.memory_space<vmem>>, vector<1x32xf32>
    %20 = vector.broadcast %19 : vector<1x32xf32> to vector<16x32xf32>
    %21 = arith.mulf %18, %20 : vector<16x32xf32>
    %c0_7 = arith.constant 0 : index
    %c0_8 = arith.constant 0 : index
    %22 = vector.load %arg4[%c0_7, %c0_8] : memref<1x32xf32, #tpu.memory_space<vmem>>, vector<1x32xf32>
    %23 = vector.broadcast %22 : vector<1x32xf32> to vector<16x32xf32>
    %24 = arith.addf %21, %23 : vector<16x32xf32>
    %25 = arith.truncf %24 : vector<16x32xf32> to vector<16x32xbf16>
    %c0_9 = arith.constant 0 : index
    %c0_10 = arith.constant 0 : index
    %26 = vector.load %arg5[%c0_9, %c0_10] : memref<64x32xf32, #tpu.memory_space<vmem>>, vector<64x32xf32>
    %27 = arith.truncf %26 : vector<64x32xf32> to vector<64x32xbf16>
    %cst_11 = arith.constant dense<0.000000e+00> : vector<16x64xf32>
    %28 = tpu.matmul %25, %27, %cst_11 {dimension_numbers = #tpu.dot_dimension_numbers<[1], [1], [0], [0], [0, 0, 1, 0], [], []>} : vector<16x32xbf16>, vector<64x32xbf16>, vector<16x64xf32> -> vector<16x64xf32>
    %c0_12 = arith.constant 0 : index
    %c0_13 = arith.constant 0 : index
    %29 = vector.load %arg6[%c0_12, %c0_13] : memref<16x64xf32, #tpu.memory_space<vmem>>, vector<16x64xf32>
    tpu.vector_store %arg6[%c0_12, %c0_13], %28 {strides = array<i32>} : memref<16x64xf32, #tpu.memory_space<vmem>>, vector<16x64xf32>,
    return
  }
  func.func @transform_0(%arg0: i32, %arg1: i32) -> (i32, i32) {
    %c0_i32 = arith.constant 0 : i32
    %c0_i32_0 = arith.constant 0 : i32
    return %arg0, %c0_i32 : i32, i32
  }
  func.func @transform_1(%arg0: i32, %arg1: i32) -> (i32, i32) {
    %c0_i32 = arith.constant 0 : i32
    %c0_i32_0 = arith.constant 0 : i32
    %c0_i32_1 = arith.constant 0 : i32
    return %c0_i32, %c0_i32_0 : i32, i32
  }
  func.func @transform_2(%arg0: i32, %arg1: i32) -> (i32, i32) {
    %c0_i32 = arith.constant 0 : i32
    %c0_i32_0 = arith.constant 0 : i32
    %c0_i32_1 = arith.constant 0 : i32
    return %c0_i32, %c0_i32_0 : i32, i32
  }
  func.func @transform_3(%arg0: i32, %arg1: i32) -> (i32, i32) {
    %c0_i32 = arith.constant 0 : i32
    %c0_i32_0 = arith.constant 0 : i32
    return %arg1, %c0_i32 : i32, i32
  }
  func.func @transform_4(%arg0: i32, %arg1: i32) -> (i32, i32) {
    %c0_i32 = arith.constant 0 : i32
    return %arg0, %arg1 : i32, i32
  }
}

</mosaic_0001>

<bundles_post_ra>
// kernel: _lambda_.11
= control target key start
LH: loop header
LB: loop body
LE: loop exit
PB: predicated region body
PF: predicated region fallthrough
CT: control target
= control target key end

     0   :  { %v104_v0 = vmov 0.0   ;;  %vm105_vm0 = vmmov 0   ;;  %vm34_vm1 = vcmask 261120   ;;  %s167_s1 = inlined_call_operand.vmem [shape: f32[32,32], index: 1, kind: input, shape index: {}]   ;;  %s168_s0 = inlined_call_operand.vmem [shape: f32[16,32], index: 0, kind: input, shape index: {}]   ;;  %s169_s2 = inlined_call_operand.vmem [shape: f32[1,32], index: 2, kind: input, shape index: {}]   ;;  %s170_s3 = inlined_call_operand.vmem [shape: f32[16,32], index: 3, kind: input, shape index: {}]   ;;  %s171_s4 = inlined_call_operand.vmem [shape: f32[16,32], index: 4, kind: output, shape index: {}]  }
   0x1   :  { %94 = vmatprep.subr.bf16.mxu0 %v104_v0  ;;  %v21_v1 = vld [vmem:[%s167_s1] sm:$0xff]  ;;  %v22_v2 = vld [vmem:[%s167_s1 + $0x8] sm:$0xff]  ;;  %v23_v3 = vld [vmem:[%s167_s1 + $0x10] sm:$0xff]  ;;  %98 = vmatprep.mubr.msk.bf16.mxu0 %vm105_vm0, %v104_v0 }
   0x2   :  { %v25_v4 = vpack.c.bf16 %v22_v2, %v21_v1  ;;  %v24_v5 = vld [vmem:[%s167_s1 + $0x18] sm:$0xff]  ;;  %v18_v7 = vld [vmem:[%s168_s0] sm:$0xff]  ;;  %v19_v8 = vld [vmem:[%s168_s0 + $0x8] sm:$0xff] }
   0x3   :  { %v26_v6 = vpack.c.bf16 %v24_v5, %v23_v3  ;;  %v20_v9 = vpack.c.bf16 %v19_v8, %v18_v7  ;;  %v89_v10 = vld [vmem:[%s169_s2] ss:$0 sm:$0xff]  ;;  %v80_v16 = vld [vmem:[%s170_s3 + $0x8] sm:$0xff] }
   0x4   :  { %95 = vmatpush3.bf16.msra.mxu0 %v25_v4  ;;  %v79_v12 = vld [vmem:[%s170_s3] sm:$0xff] }
   0x5   :  { %96 = vmatprep.subr.bf16.mxu0 %v104_v0 }
   0x8   :  { %97 = vmatpush3.bf16.msra.mxu0 %v26_v6 }
   0xb   :  { %99 = vmatmul.mubr.msk.bf16.vlgmr.msra.gmra.mrb[0].mxu0 %vm34_vm1, %v20_v9 }
  0xde   :  { %v72_v11 = vpop.f32.mrb[0].mxu0 }
  0xdf   :  { %v73_v13 = vadd.f32 %v89_v10, %v72_v11  ;;  %v100_v14 = vpop.f32.mrb[1].mxu0 }
  0xe0   :  { %v75_v15 = vpop.f32.mrb[2].mxu0 }
  0xe1   :  { %v81_v17 = vadd.f32 %v79_v12, %v73_v13  ;;  %v76_v18 = vadd.f32 %v89_v10, %v75_v15  ;;  %v101_v19 = vpop.f32.mrb[3].mxu0 }
  0xe3   :  { %83 = vst.msk [vmem:[%s171_s4] sm:$0xff] %vm34_vm1, %v81_v17  ;;  %v82_v20 = vadd.f32 %v80_v16, %v76_v18 }
  0xe5   :  { %84 = vst.msk [vmem:[%s171_s4 + $0x8] sm:$0xff] %vm34_vm1, %v82_v20 }

// kernel: _lambda_.9
= control target key start
LH: loop header
LB: loop body
LE: loop exit
PB: predicated region body
PF: predicated region fallthrough
CT: control target
= control target key end

     0   :  { %vm23_vm0 = vcmask 261120   ;;  %v155_v17 = vmov 0.0   ;;  %vm156_vm1 = vmmov 0   ;;  %vm127_vm2 = vcmask 785408   ;;  %s225_s0 = inlined_call_operand.vmem [shape: f32[16,32], index: 0, kind: input, shape index: {}]   ;;  %s226_s3 = inlined_call_operand.vmem [shape: f32[32,96], index: 3, kind: input, shape index: {}]   ;;  %s227_s1 = inlined_call_operand.vmem [shape: f32[1,32], index: 1, kind: input, shape index: {}]   ;;  %s228_s2 = inlined_call_operand.vmem [shape: f32[1,32], index: 2, kind: input, shape index: {}]   ;;  %s229_s4 = inlined_call_operand.vmem [shape: f32[1,96], index: 4, kind: input, shape index: {}]   ;;  %s230_s5 = inlined_call_operand.vmem [shape: f32[16,96], index: 5, kind: output, shape index: {}]  }
   0x1   :  { %v21_v0 = vld [vmem:[%s225_s0] sm:$0xff]  ;;  %v22_v1 = vld [vmem:[%s225_s0 + $0x8] sm:$0xff]  ;;  %141 = vmatprep.subr.bf16.mxu0 %v155_v17  ;;  %v72_v18 = vld [vmem:[%s226_s3 + $0x10] sm:$0xff]  ;;  %145 = vmatprep.mubr.msk.bf16.mxu0 %vm156_vm1, %v155_v17 }
   0x2   :  { %v24_v2 = vsel %vm23_vm0, %v21_v0, 0.0  ;;  %v27_v3 = vsel %vm23_vm0, %v22_v1, 0.0  ;;  %v70_v14 = vld [vmem:[%s226_s3] sm:$0xff]  ;;  %v71_v15 = vld [vmem:[%s226_s3 + $0x8] sm:$0xff]  ;;  %v73_v19 = vld [vmem:[%s226_s3 + $0x18] sm:$0xff] }
   0x3   :  { %25 = vadd.xlane.f32.xlu0 %v24_v2  ;;  %v74_v16 = vpack.c.bf16 %v71_v15, %v70_v14  ;;  %v75_v20 = vpack.c.bf16 %v73_v19, %v72_v18  ;;  %v134_v29 = vld [vmem:[%s227_s1] ss:$0 sm:$0xff] }
   0x4   :  { %v135_v33 = vld [vmem:[%s228_s2] ss:$0 sm:$0xff] }
   0x5   :  { %142 = vmatpush3.bf16.msra.mxu0 %v74_v16  ;;  %v136_v38 = vld [vmem:[%s229_s4] ss:$0 sm:$0xff] }
   0x6   :  { %143 = vmatprep.subr.bf16.mxu0 %v155_v17 }
   0x7   :  { %28 = vadd.xlane.f32.xlu0 %v27_v3 }
   0x9   :  { %144 = vmatpush3.bf16.msra.mxu0 %v75_v20 }
  0x90   :  { %v26_v4 = vpop.xlane.xlu0 %25 }
  0x91   :  { %v31_v5 = vmul.f32 0.03125, %v26_v4 }
  0x93   :  { %v33_v6 = vsub.f32 %v21_v0, %v31_v5 }
  0x94   :  { %v29_v7 = vpop.xlane.xlu0 %28 }
  0x95   :  { %v32_v8 = vmul.f32 0.03125, %v29_v7  ;;  %v35_v9 = vmul.f32 %v33_v6, %v33_v6 }
  0x97   :  { %v34_v10 = vsub.f32 %v22_v1, %v32_v8  ;;  %v37_v11 = vsel %vm23_vm0, %v35_v9, 0.0 }
  0x98   :  { %38 = vadd.xlane.f32.xlu1 %v37_v11 }
  0x99   :  { %v36_v12 = vmul.f32 %v34_v10, %v34_v10 }
  0x9b   :  { %v40_v13 = vsel %vm23_vm0, %v36_v12, 0.0 }
  0x9c   :  { %41 = vadd.xlane.f32.xlu1 %v40_v13 }
 0x125   :  { %v39_v21 = vpop.xlane.xlu1 %38 }
 0x126   :  { %v43_v22 = vmul.f32 0.03125, %v39_v21 }
 0x128   :  { %v45_v23 = vadd.f32 1e-05, %v43_v22 }
 0x129   :  { %v42_v24 = vpop.xlane.xlu1 %41 }
 0x12a   :  { %151 = vrsqrt.f32 %v45_v23  ;;  %v44_v25 = vmul.f32 0.03125, %v42_v24 }
 0x12c   :  { %v46_v26 = vadd.f32 1e-05, %v44_v25 }
 0x12e   :  { %153 = vrsqrt.f32 %v46_v26 }
 0x134   :  { %v152_v27 = vpop.eup %151 }
 0x135   :  { %v49_v28 = vmul.f32 %v152_v27, %v33_v6 }
 0x137   :  { %v58_v32 = vmul.f32 %v134_v29, %v49_v28 }
 0x138   :  { %v154_v30 = vpop.eup %153 }
 0x139   :  { %v50_v31 = vmul.f32 %v154_v30, %v34_v10  ;;  %v67_v35 = vadd.f32 %v135_v33, %v58_v32 }
 0x13b   :  { %v59_v34 = vmul.f32 %v134_v29, %v50_v31 }
 0x13d   :  { %v68_v36 = vadd.f32 %v135_v33, %v59_v34 }
 0x13f   :  { %v69_v37 = vpack.c.bf16 %v68_v36, %v67_v35 }
 0x141   :  { %146 = vmatmul.mubr.msk.bf16.vlgmr.msra.gmra.mrb[0].mxu0 %vm23_vm0, %v69_v37 }
 0x214   :  { %v120_v39 = vpop.f32.mrb[0].mxu0 }
 0x215   :  { %v121_v40 = vadd.f32 %v136_v38, %v120_v39  ;;  %v147_v41 = vpop.f32.mrb[1].mxu0 }
 0x216   :  { %v123_v42 = vpop.f32.mrb[2].mxu0 }
 0x217   :  { %128 = vst.msk [vmem:[%s230_s5] sm:$0xff] %vm127_vm2, %v121_v40  ;;  %v124_v43 = vadd.f32 %v136_v38, %v123_v42  ;;  %v148_v44 = vpop.f32.mrb[3].mxu0 }
 0x219   :  { %129 = vst.msk [vmem:[%s230_s5 + $0x8] sm:$0xff] %vm127_vm2, %v124_v43 }

// kernel: _lambda_.12
= control target key start
LH: loop header
LB: loop body
LE: loop exit
PB: predicated region body
PF: predicated region fallthrough
CT: control target
= control target key end

     0   :  { %vm29_vm0 = vcmask 261120   ;;  %v279_v17 = vmov 0.0   ;;  %vm280_vm1 = vmmov 0   ;;  %s434_s0 = inlined_call_operand.vmem [shape: f32[16,32], index: 0, kind: input, shape index: {}]   ;;  %s435_s3 = inlined_call_operand.vmem [shape: f32[32,128], index: 3, kind: input, shape index: {}]   ;;  %s436_s5 = inlined_call_operand.vmem [shape: f32[128,32], index: 5, kind: input, shape index: {}]   ;;  %s437_s1 = inlined_call_operand.vmem [shape: f32[1,32], index: 1, kind: input, shape index: {}]   ;;  %s438_s2 = inlined_call_operand.vmem [shape: f32[1,32], index: 2, kind: input, shape index: {}]   ;;  %s439_s4 = inlined_call_operand.vmem [shape: f32[1,128], index: 4, kind: input, shape index: {}]   ;;  %s440_s6 = inlined_call_operand.vmem [shape: f32[1,32], index: 6, kind: input, shape index: {}]   ;;  %s441_s7 = inlined_call_operand.vmem [shape: f32[16,32], index: 7, kind: output, shape index: {}]  }
   0x1   :  { %v324_v0 = vld [vmem:[%s434_s0] sm:$0xff]  ;;  %v329_v1 = vld [vmem:[%s434_s0 + $0x8] sm:$0xff]  ;;  %241 = vmatprep.subr.bf16.mxu0 %v279_v17  ;;  %v78_v18 = vld [vmem:[%s435_s3 + $0x10] sm:$0xff]  ;;  %249 = vmatprep.subr.bf16.mxu1 %v279_v17 }
   0x2   :  { %v30_v2 = vsel %vm29_vm0, %v324_v0, 0.0  ;;  %v33_v3 = vsel %vm29_vm0, %v329_v1, 0.0  ;;  %v76_v14 = vld [vmem:[%s435_s3] sm:$0xff]  ;;  %v77_v15 = vld [vmem:[%s435_s3 + $0x8] sm:$0xff]  ;;  %v79_v19 = vld [vmem:[%s435_s3 + $0x18] sm:$0xff]  ;;  %245 = vmatprep.mubr.msk.bf16.mxu0 %vm280_vm1, %v279_v17  ;;  %265 = vmatprep.mubr.msk.bf16.mxu1 %vm280_vm1, %v279_v17 }
   0x3   :  { %31 = vadd.xlane.f32.xlu0 %v30_v2  ;;  %v80_v16 = vpack.c.bf16 %v77_v15, %v76_v14  ;;  %v81_v20 = vpack.c.bf16 %v79_v19, %v78_v18  ;;  %v144_v21 = vld [vmem:[%s436_s5] sm:$0xff]  ;;  %v145_v22 = vld [vmem:[%s436_s5 + $0x8] sm:$0xff]  ;;  %v146_v23 = vld [vmem:[%s436_s5 + $0x10] sm:$0xff] }
   0x4   :  { %v160_v24 = vpack.c.bf16 %v145_v22, %v144_v21  ;;  %v147_v25 = vld [vmem:[%s436_s5 + $0x18] sm:$0xff]  ;;  %v224_v35 = vld [vmem:[%s437_s1] ss:$0 sm:$0xff]  ;;  %v149_v45 = vld [vmem:[%s436_s5 + $0x28] sm:$0xff] }
   0x5   :  { %242 = vmatpush3.bf16.msra.mxu0 %v80_v16  ;;  %v161_v26 = vpack.c.bf16 %v147_v25, %v146_v23  ;;  %v225_v39 = vld [vmem:[%s438_s2] ss:$0 sm:$0xff]  ;;  %v150_v47 = vld [vmem:[%s436_s5 + $0x30] sm:$0xff]  ;;  %v151_v48 = vld [vmem:[%s436_s5 + $0x38] sm:$0xff] }
   0x6   :  { %243 = vmatprep.subr.bf16.mxu0 %v279_v17  ;;  %250 = vmatpush3.bf16.msra.mxu1 %v160_v24  ;;  %v148_v44 = vld [vmem:[%s436_s5 + $0x20] sm:$0xff]  ;;  %v163_v49 = vpack.c.bf16 %v151_v48, %v150_v47  ;;  %v153_v51 = vld [vmem:[%s436_s5 + $0x48] sm:$0xff]  ;;  %v154_v53 = vld [vmem:[%s436_s5 + $0x50] sm:$0xff] }
   0x7   :  { %34 = vadd.xlane.f32.xlu0 %v33_v3  ;;  %251 = vmatprep.subr.bf16.mxu1 %v279_v17  ;;  %v162_v46 = vpack.c.bf16 %v149_v45, %v148_v44  ;;  %v152_v50 = vld [vmem:[%s436_s5 + $0x40] sm:$0xff]  ;;  %v155_v54 = vld [vmem:[%s436_s5 + $0x58] sm:$0xff]  ;;  %v157_v57 = vld [vmem:[%s436_s5 + $0x68] sm:$0xff] }
   0x8   :  { %v164_v52 = vpack.c.bf16 %v153_v51, %v152_v50  ;;  %v165_v55 = vpack.c.bf16 %v155_v54, %v154_v53  ;;  %v156_v56 = vld [vmem:[%s436_s5 + $0x60] sm:$0xff]  ;;  %v158_v59 = vld [vmem:[%s436_s5 + $0x70] sm:$0xff]  ;;  %v159_v60 = vld [vmem:[%s436_s5 + $0x78] sm:$0xff] }
   0x9   :  { %244 = vmatpush3.bf16.msra.mxu0 %v81_v20  ;;  %v166_v58 = vpack.c.bf16 %v157_v57, %v156_v56  ;;  %v167_v61 = vpack.c.bf16 %v159_v60, %v158_v59  ;;  %v226_v62 = vld [vmem:[%s439_s4] ss:$0 sm:$0xff] }
   0xa   :  { %252 = vmatpush3.bf16.msra.mxu1 %v161_v26  ;;  %v228_v18 = vld [vmem:[%s440_s6] ss:$0 sm:$0xff] }
   0xb   :  { %253 = vmatprep.subr.bf16.mxu1 %v279_v17 }
   0xe   :  { %254 = vmatpush3.bf16.msra.mxu1 %v162_v46 }
   0xf   :  { %255 = vmatprep.subr.bf16.mxu1 %v279_v17 }
  0x12   :  { %256 = vmatpush3.bf16.msra.mxu1 %v163_v49 }
  0x13   :  { %257 = vmatprep.subr.bf16.mxu1 %v279_v17 }
  0x16   :  { %258 = vmatpush3.bf16.msra.mxu1 %v164_v52 }
  0x17   :  { %259 = vmatprep.subr.bf16.mxu1 %v279_v17 }
  0x1a   :  { %260 = vmatpush3.bf16.msra.mxu1 %v165_v55 }
  0x1b   :  { %261 = vmatprep.subr.bf16.mxu1 %v279_v17 }
  0x1e   :  { %262 = vmatpush3.bf16.msra.mxu1 %v166_v58 }
  0x1f   :  { %263 = vmatprep.subr.bf16.mxu1 %v279_v17 }
  0x22   :  { %264 = vmatpush3.bf16.msra.mxu1 %v167_v61 }
  0x90   :  { %v32_v4 = vpop.xlane.xlu0 %31 }
  0x91   :  { %v37_v5 = vmul.f32 0.03125, %v32_v4 }
  0x93   :  { %v39_v6 = vsub.f32 %v324_v0, %v37_v5 }
  0x94   :  { %v35_v7 = vpop.xlane.xlu0 %34 }
  0x95   :  { %v38_v8 = vmul.f32 0.03125, %v35_v7  ;;  %v41_v9 = vmul.f32 %v39_v6, %v39_v6 }
  0x97   :  { %v40_v10 = vsub.f32 %v329_v1, %v38_v8  ;;  %v43_v11 = vsel %vm29_vm0, %v41_v9, 0.0 }
  0x98   :  { %44 = vadd.xlane.f32.xlu1 %v43_v11 }
  0x99   :  { %v42_v12 = vmul.f32 %v40_v10, %v40_v10 }
  0x9b   :  { %v46_v13 = vsel %vm29_vm0, %v42_v12, 0.0 }
  0x9c   :  { %47 = vadd.xlane.f32.xlu1 %v46_v13 }
 0x125   :  { %v45_v27 = vpop.xlane.xlu1 %44 }
 0x126   :  { %v49_v28 = vmul.f32 0.03125, %v45_v27 }
 0x128   :  { %v51_v29 = vadd.f32 1e-05, %v49_v28 }
 0x129   :  { %v48_v30 = vpop.xlane.xlu1 %47 }
 0x12a   :  { %271 = vrsqrt.f32 %v51_v29  ;;  %v50_v31 = vmul.f32 0.03125, %v48_v30 }
 0x12c   :  { %v52_v32 = vadd.f32 1e-05, %v50_v31 }
 0x12e   :  { %273 = vrsqrt.f32 %v52_v32 }
 0x134   :  { %v272_v33 = vpop.eup %271 }
 0x135   :  { %v55_v34 = vmul.f32 %v272_v33, %v39_v6 }
 0x137   :  { %v64_v38 = vmul.f32 %v224_v35, %v55_v34 }
 0x138   :  { %v274_v36 = vpop.eup %273 }
 0x139   :  { %v56_v37 = vmul.f32 %v274_v36, %v40_v10  ;;  %v73_v41 = vadd.f32 %v225_v39, %v64_v38 }
 0x13b   :  { %v65_v40 = vmul.f32 %v224_v35, %v56_v37 }
 0x13d   :  { %v74_v42 = vadd.f32 %v225_v39, %v65_v40 }
 0x13f   :  { %v75_v43 = vpack.c.bf16 %v74_v42, %v73_v41 }
 0x141   :  { %246 = vmatmul.mubr.msk.bf16.vlgmr.msra.gmra.mrb[0].mxu0 %vm29_vm0, %v75_v43 }
 0x214   :  { %v126_v63 = vpop.f32.mrb[0].mxu0 }
 0x215   :  { %v127_v2 = vadd.f32 %v226_v62, %v126_v63  ;;  %v247_v3 = vpop.f32.mrb[1].mxu0 }
 0x216   :  { %v129_v4 = vpop.f32.mrb[2].mxu0 }
 0x217   :  { %v135_v5 = vmul.f32 0.70710677, %v127_v2  ;;  %v130_v6 = vadd.f32 %v226_v62, %v129_v4  ;;  %v248_v7 = vpop.f32.mrb[3].mxu0  ;;  %v133_v12 = vmul.f32 0.5, %v127_v2 }
 0x219   :  { %275 = verf.f32 %v135_v5  ;;  %v136_v8 = vmul.f32 0.70710677, %v130_v6  ;;  %v134_v13 = vmul.f32 0.5, %v130_v6 }
 0x21b   :  { %277 = verf.f32 %v136_v8 }
 0x223   :  { %v276_v9 = vpop.eup %275 }
 0x224   :  { %v139_v10 = vadd.f32 1.0, %v276_v9 }
 0x225   :  { %v278_v11 = vpop.eup %277 }
 0x226   :  { %v140_v14 = vadd.f32 1.0, %v278_v11  ;;  %v141_v15 = vmul.f32 %v139_v10, %v133_v12 }
 0x228   :  { %v142_v16 = vmul.f32 %v140_v14, %v134_v13 }
 0x22a   :  { %v143_v17 = vpack.c.bf16 %v142_v16, %v141_v15 }
 0x22c   :  { %266 = vmatmul.mubr.bf16.vlgmr.msra.gmra.mrb[0].mxu1 %v143_v17 }
 0x2ff   :  { %v209_v19 = vpop.f32.mrb[0].mxu1 }
 0x300   :  { %v210_v20 = vadd.f32 %v228_v18, %v209_v19  ;;  %v267_v21 = vpop.f32.mrb[1].mxu1 }
 0x301   :  { %v212_v22 = vpop.f32.mrb[2].mxu1 }
 0x302   :  { %v216_v23 = vadd.f32 %v210_v20, %v324_v0  ;;  %v213_v24 = vadd.f32 %v228_v18, %v212_v22  ;;  %v268_v25 = vpop.f32.mrb[3].mxu1 }
 0x304   :  { %218 = vst.msk [vmem:[%s441_s7] sm:$0xff] %vm29_vm0, %v216_v23  ;;  %v217_v26 = vadd.f32 %v213_v24, %v329_v1 }
 0x306   :  { %219 = vst.msk [vmem:[%s441_s7 + $0x8] sm:$0xff] %vm29_vm0, %v217_v26 }

// kernel: _lambda_.10
= control target key start
LH: loop header
LB: loop body
LE: loop exit
PB: predicated region body
PF: predicated region fallthrough
CT: control target
= control target key end

     0   :  { %s2258_s12 = smov 0   ;;  %s2260_s13 = smov 0   ;;  %s2442_s0 = inlined_call_operand.vmem [shape: f32[2,8,4,8], index: 0, kind: input, shape index: {}]   ;;  %s2443_s1 = inlined_call_operand.vmem [shape: f32[2,8,4,8], index: 1, kind: input, shape index: {}]   ;;  %s2444_s2 = inlined_call_operand.vmem [shape: f32[2,8,4,8], index: 2, kind: input, shape index: {}]   ;;  %s2445_s3 = inlined_call_operand.vmem [shape: f32[2,8,32], index: 3, kind: output, shape index: {}]  }
   0x1   :  { %s2262_s14 = smov 0  }
   0x2 LB: > { %s32_s15 = sadd.s32 1, %s2224_s13  ;;  %p2073_p0 = scmp.ge.s32.totalorder %s2228_s14, 1  ;;  %s2228_s14 = sphi %s2262_s14, %s13_s14   ;;  %s2224_s13 = sphi %s2260_s13, %s2447_s13   ;;  %s2220_s12 = sphi %s2258_s12, %s2446_s12  }
   0x3   : > { %p34_p1 = scmp.ge.s32.totalorder %s32_s15, 2  ;;  %p199_p2 = scmp.lt.s32.totalorder %s2228_s14, 3 }
   0x5   : > { %s2449_s15 = smov (%p34_p1, %s32_s15), 0  ;;  %p200_p3 = pnand %p2073_p0, %p199_p2 }
   0x6   : > { %p248_p4 = scmp.lt.s32.totalorder (!%p200_p3), %s2220_s12, 1  ;;  %v2230_v18 = vmov (!%p200_p3), 1983009808   ;;  %v343_v20 = vlaneseq (!%p200_p3)  ;;  %v2231_v23 = vmov (!%p200_p3), 1934713408   ;;  %v2232_v50 = vmov (!%p200_p3), 0.0  }
   0x7   : > { %203 = sbr.rel (%p200_p3) target bundleno = 1054 (0x41e), region = 32  ;;  %v341_v19 = vunpack.c.l.s4 (!%p200_p3), %v2230_v18  ;;  %v357_v24 = vunpack.c.l.s4 (!%p200_p3), %v2231_v23  ;;  %2116 = vmatprep.subr.bf16.mxu0 (!%p200_p3), %v2232_v50  ;;  %2122 = vmatprep.subr.bf16.mxu1 (!%p200_p3), %v2232_v50  ;;  %v2233_v57 = vmov (!%p200_p3), 0   ;;  %vm2234_vm0 = vmmov (!%p200_p3), 0   ;;  %s2235_s26 = smov (!%p200_p3), 16  }
   0x8   : > { %v2286_v26 = vshrl.u32 (!%p200_p3), %v343_v20, 7  ;;  %2118 = vmatprep.mubr.msk.bf16.mxu0 (!%p200_p3), %vm2234_vm0, %v2232_v50  ;;  %2124 = vmatprep.mubr.msk.bf16.mxu1 (!%p200_p3), %vm2234_vm0, %v2232_v50  ;;  %vm823_vm1 = vcmask (!%p200_p3), 1043456   ;;  %vm819_vm2 = vcmask (!%p200_p3), 64512   ;;  %vm289_vm4 = vcmask (!%p200_p3), 261120   ;;  %s2236_s27 = smov (!%p200_p3), 8   ;;  %s2237_s28 = smov (!%p200_p3), 24  }
   0x9   : > { %v342_v25 = vunpack.c.0.s8 (!%p200_p3), %v341_v19  ;;  %v358_v29 = vunpack.c.0.s8 (!%p200_p3), %v357_v24  ;;  %290 = vst.msk [vmem:[#allocation2] sm:$0xff] (!%p200_p3), %vm289_vm4, %v2232_v50  ;;  %vm1941_vm5 = vcmask (!%p200_p3), 130048   ;;  %vm1943_vm6 = vcmask (!%p200_p3), 195584  }
   0xb   : > { %v2289_v30 = vsub.s32 (!%p200_p3), %v342_v25, %v2286_v26  ;;  %v2292_v37 = vsub.s32 (!%p200_p3), %v358_v29, %v2286_v26 }
   0xe   : > { %s2451_s12 = smov (!%p248_p4, %s2220_s12), 1 }
   0xf   : > { %s2279_s16 = sshll.u32 %s2451_s12, 5  ;;  %s2080_s29 = sshll.u32 %s2451_s12, 3 }
  0x10   : > { %s265_s19 = scalar_lea.vmem %s2443_s1, %s2279_s16  ;;  %s275_s22 = scalar_lea.vmem %s2444_s2, %s2279_s16 }
  0x11   : > { %v309_v0 = vld [vmem:[%s265_s19 + $0x8] sm:$0xf]  ;;  %v307_v1 = vld [vmem:[%s265_s19] sm:$0xf]  ;;  %v310_v2 = vld [vmem:[%s265_s19 + $0xc] sm:$0xf]  ;;  %s255_s25 = scalar_lea.vmem %s2442_s0, %s2279_s16  ;;  %s283_s5 = scalar_lea.vmem %s2445_s3, %s2080_s29 }
  0x12   : > { %v317_v3 = vpack.c.bf16 %v309_v0, %v309_v0  ;;  %v315_v4 = vpack.c.bf16 %v307_v1, %v307_v1  ;;  %v308_v5 = vld [vmem:[%s265_s19 + $0x4] sm:$0xf]  ;;  %v318_v6 = vpack.c.bf16 %v310_v2, %v310_v2  ;;  %v312_v8 = vld [vmem:[%s265_s19 + $0x14] sm:$0xf]  ;;  %v311_v9 = vld [vmem:[%s265_s19 + $0x10] sm:$0xf] }
  0x13   : > { %v316_v7 = vpack.c.bf16 %v308_v5, %v308_v5  ;;  %v320_v10 = vpack.c.bf16 %v312_v8, %v312_v8  ;;  %v319_v11 = vpack.c.bf16 %v311_v9, %v311_v9  ;;  %v314_v12 = vld [vmem:[%s265_s19 + $0x1c] sm:$0xf]  ;;  %v313_v13 = vld [vmem:[%s265_s19 + $0x18] sm:$0xf]  ;;  %v324_v8 = vld [vmem:[%s275_s22 + $0x4] sm:$0xf] }
  0x14   : > { %433 = vxpose.xlu1.c.b16.start.end [1/1] (short) (narrow) %v317_v3, 16  ;;  %401 = vxpose.xlu0.c.b16.start.end [1/1] (short) (narrow) %v315_v4, 16  ;;  %v322_v14 = vpack.c.bf16 %v314_v12, %v314_v12  ;;  %v321_v15 = vpack.c.bf16 %v313_v13, %v313_v13  ;;  %v332_v12 = vpack.c.bf16 %v324_v8, %v324_v8  ;;  %v326_v13 = vld [vmem:[%s275_s22 + $0xc] sm:$0xf]  ;;  %v329_v19 = vld [vmem:[%s275_s22 + $0x18] sm:$0xf] }
  0x15   : > { %v337_v23 = vpack.c.bf16 %v329_v19, %v329_v19 }
  0x18   : > { %449 = vxpose.xlu1.c.b16.start.end [1/1] (short) (narrow) %v318_v6, 16  ;;  %417 = vxpose.xlu0.c.b16.start.end [1/1] (short) (narrow) %v316_v7, 16  ;;  %v323_v6 = vld [vmem:[%s275_s22] sm:$0xf] }
  0x1c   : > { %481 = vxpose.xlu1.c.b16.start.end [1/1] (short) (narrow) %v320_v10, 16  ;;  %465 = vxpose.xlu0.c.b16.start.end [1/1] (short) (narrow) %v319_v11, 16  ;;  %v331_v10 = vpack.c.bf16 %v323_v6, %v323_v6  ;;  %v325_v11 = vld [vmem:[%s275_s22 + $0x8] sm:$0xf] }
  0x20   : > { %513 = vxpose.xlu1.c.b16.start.end [1/1] (short) (narrow) %v322_v14, 16  ;;  %497 = vxpose.xlu0.c.b16.start.end [1/1] (short) (narrow) %v321_v15, 16  ;;  %v333_v14 = vpack.c.bf16 %v325_v11, %v325_v11  ;;  %v327_v15 = vld [vmem:[%s275_s22 + $0x10] sm:$0xf] }
  0x21   : > { %v335_v18 = vpack.c.bf16 %v327_v15, %v327_v15 }
  0x7a   : > { %v441_v16 = vpop.trf.xlu1  ;;  %v409_v17 = vpop.trf.xlu0 }
  0x7e   : > { %v457_v21 = vpop.trf.xlu1  ;;  %v425_v22 = vpop.trf.xlu0 }
  0x82   : > { %v489_v27 = vpop.trf.xlu1  ;;  %v473_v28 = vpop.trf.xlu0 }
  0x83   : > { %v563_v31 = vcombine.low %v425_v22, %v489_v27  ;;  %v529_v32 = vcombine.low %v409_v17, %v473_v28  ;;  %v328_v17 = vld [vmem:[%s275_s22 + $0x14] sm:$0xf]  ;;  %v330_v22 = vld [vmem:[%s275_s22 + $0x1c] sm:$0xf]  ;;  %v291_v27 = vld [vmem:[%s255_s25] sm:$0xf] }
  0x84   : > { %v338_v24 = vpack.c.bf16 %v330_v22, %v330_v22  ;;  %v292_v28 = vld [vmem:[%s255_s25 + $0x4] sm:$0xf] }
  0x85   : > { %v570_v38 = vrot.slane %v563_v31, %v2289_v30  ;;  %v536_v39 = vrot.slane %v529_v32, %v2289_v30  ;;  %v293_v31 = vld [vmem:[%s255_s25 + $0x8] sm:$0xf]  ;;  %v294_v32 = vld [vmem:[%s255_s25 + $0xc] sm:$0xf] }
  0x86   : > { %v521_v33 = vpop.trf.xlu1  ;;  %v505_v34 = vpop.trf.xlu0 }
  0x87   : > { %v571_v35 = vcombine.low %v457_v21, %v521_v33  ;;  %v537_v36 = vcombine.low %v441_v16, %v505_v34  ;;  %v334_v16 = vpack.c.bf16 %v326_v13, %v326_v13  ;;  %v336_v21 = vpack.c.bf16 %v328_v17, %v328_v17  ;;  %v295_v33 = vld [vmem:[%s255_s25 + $0x10] sm:$0xf]  ;;  %v296_v34 = vld [vmem:[%s255_s25 + $0x14] sm:$0xf] }
  0x89   : > { %v578_v40 = vrot.slane %v571_v35, %v2289_v30  ;;  %v544_v41 = vrot.slane %v537_v36, %v2289_v30  ;;  %v297_v35 = vld [vmem:[%s255_s25 + $0x18] sm:$0xf]  ;;  %v298_v36 = vld [vmem:[%s255_s25 + $0x1c] sm:$0xf] }
  0x8b   : > { %v579_v42 = vcombine.low %v570_v38, %v578_v40  ;;  %v580_v43 = vcombine.high %v570_v38, %v578_v40  ;;  %v545_v44 = vcombine.low %v536_v39, %v544_v41  ;;  %v546_v45 = vcombine.high %v536_v39, %v544_v41 }
  0x8c   : > { %v2081_v40 = vpack.c.bf16 %v295_v33, %v291_v27  ;;  %v2082_v41 = vpack.c.bf16 %v297_v35, %v293_v31 }
  0x8d   : > { %v553_v46 = vrot.slane %v545_v44, %v2292_v37  ;;  %v587_v47 = vrot.slane %v579_v42, %v2292_v37  ;;  %v560_v48 = vrot.slane %v546_v45, %v2292_v37  ;;  %v594_v49 = vrot.slane %v580_v43, %v2292_v37 }
  0x8e   : > { %v2083_v42 = vpack.c.bf16 %v296_v34, %v292_v28  ;;  %v2084_v43 = vpack.c.bf16 %v298_v36, %v294_v32 }
  0x8f   : > { %v599_v51 = vpack.i.b16 %v587_v47, %v553_v46  ;;  %v601_v52 = vshrl.u32 %v553_v46, 16  ;;  %v602_v53 = vshrl.u32 %v587_v47, 16  ;;  %v617_v54 = vshrl.u32 %v560_v48, 16 }
  0x90   : > { %v618_v55 = vshrl.u32 %v594_v49, 16  ;;  %v561_v58 = vcombine.high %v553_v46, %v2233_v57  ;;  %v595_v59 = vcombine.high %v587_v47, %v2233_v57  ;;  %v615_v60 = vpack.i.b16 %v594_v49, %v560_v48 }
  0x91   : > { %629 = vxpose.xlu0.c.b16.start.end [1/1] (short) (narrow) %v599_v51, 16  ;;  %v603_v56 = vpack.i.b16 %v602_v53, %v601_v52  ;;  %v562_v61 = vcombine.high %v560_v48, %v2233_v57  ;;  %v596_v1 = vcombine.high %v594_v49, %v2233_v57  ;;  %v346_v46 = vrot.slane %v2081_v40, %v2289_v30 }
  0x92   : > { %v619_v62 = vpack.i.b16 %v618_v55, %v617_v54  ;;  %v609_v63 = vshrl.u32 %v561_v58, 16  ;;  %v610_v0 = vshrl.u32 %v595_v59, 16  ;;  %v607_v2 = vpack.i.b16 %v595_v59, %v561_v58 }
  0x93   : > { %645 = vxpose.xlu1.c.b16.start.end [1/1] (short) (narrow) %v603_v56, 16  ;;  %v625_v4 = vshrl.u32 %v562_v61, 16  ;;  %v626_v5 = vshrl.u32 %v596_v1, 16  ;;  %v623_v7 = vpack.i.b16 %v596_v1, %v562_v61  ;;  %v354_v47 = vrot.slane %v2082_v41, %v2289_v30 }
  0x94   : > { %v611_v3 = vpack.i.b16 %v610_v0, %v609_v63  ;;  %v371_v48 = vrot.slane %v2083_v42, %v2289_v30  ;;  %v379_v49 = vrot.slane %v2084_v43, %v2289_v30 }
  0x95   : > { %693 = vxpose.xlu0.c.b16.start.end [1/1] (short) (narrow) %v615_v60, 16  ;;  %v627_v9 = vpack.i.b16 %v626_v5, %v625_v4  ;;  %v355_v56 = vcombine.low %v346_v46, %v354_v47 }
  0x96   : > { %v380_v58 = vcombine.low %v371_v48, %v379_v49 }
  0x97   : > { %709 = vxpose.xlu1.c.b16.start.end [1/1] (short) (narrow) %v619_v62, 16 }
  0x99   : > { %661 = vxpose.xlu0.c.b16.start.end [1/1] (short) (narrow) %v607_v2, 16  ;;  %v362_v2 = vrot.slane %v355_v56, %v2292_v37 }
  0x9b   : > { %677 = vxpose.xlu1.c.b16.start.end [1/1] (short) (narrow) %v611_v3, 16  ;;  %v387_v3 = vrot.slane %v380_v58, %v2292_v37 }
  0x9d   : > { %725 = vxpose.xlu0.c.b16.start.end [1/1] (short) (narrow) %v623_v7, 16  ;;  %v393_v11 = vshrl.u32 %v387_v3, 16  ;;  %v391_v17 = vpack.i.b16 %v387_v3, %v362_v2  ;;  %v388_v27 = vcombine.high %v387_v3, %v2233_v57 }
  0x9f   : > { %741 = vxpose.xlu1.c.b16.start.end [1/1] (short) (narrow) %v627_v9, 16  ;;  %v399_v41 = vshrl.u32 %v388_v27, 16 }
  0xa1   : > { %1061 = vxpose.xlu0.c.b16.start.end [1/1] (short) (narrow) %v331_v10, 16  ;;  %v392_v10 = vshrl.u32 %v362_v2, 16 }
  0xa3   : > { %1077 = vxpose.xlu1.c.b16.start.end [1/1] (short) (narrow) %v332_v12, 16  ;;  %v394_v32 = vpack.i.b16 %v393_v11, %v392_v10 }
  0xa5   : > { %1093 = vxpose.xlu0.c.b16.start.end [1/1] (short) (narrow) %v333_v14, 16 }
  0xa7   : > { %1109 = vxpose.xlu1.c.b16.start.end [1/1] (short) (narrow) %v334_v16, 16 }
  0xa9   : > { %1125 = vxpose.xlu0.c.b16.start.end [1/1] (short) (narrow) %v335_v18, 16 }
  0xab   : > { %1141 = vxpose.xlu1.c.b16.start.end [1/1] (short) (narrow) %v336_v21, 16 }
  0xad   : > { %1157 = vxpose.xlu0.c.b16.start.end [1/1] (short) (narrow) %v337_v23, 16 }
  0xaf   : > { %1173 = vxpose.xlu1.c.b16.start.end [1/1] (short) (narrow) %v338_v24, 16 }
  0xf7   : > { %v637_v25 = vpop.trf.xlu0 }
  0xf9   : > { %v653_v29 = vpop.trf.xlu1 }
  0xfb   : > { %v701_v38 = vpop.trf.xlu0 }
  0xfc   : > { %v757_v51 = vcombine.low %v637_v25, %v701_v38  ;;  %v363_v25 = vcombine.high %v362_v2, %v2233_v57 }
  0xfd   : > { %v717_v39 = vpop.trf.xlu1 }
  0xfe   : > { %v782_v53 = vcombine.low %v653_v29, %v717_v39  ;;  %v764_v59 = vrot.slane %v757_v51, %v2289_v30  ;;  %v398_v40 = vshrl.u32 %v363_v25, 16  ;;  %v397_v47 = vpack.i.b16 %v388_v27, %v363_v25 }
  0xff   : > { %v669_v44 = vpop.trf.xlu0 }
 0x100   : > { %v789_v63 = vrot.slane %v782_v53, %v2289_v30 }
 0x101   : > { %v685_v45 = vpop.trf.xlu1 }
 0x103   : > { %v733_v52 = vpop.trf.xlu0 }
 0x104   : > { %v765_v54 = vcombine.low %v669_v44, %v733_v52  ;;  %v400_v52 = vpack.i.b16 %v399_v41, %v398_v40 }
 0x105   : > { %v749_v55 = vpop.trf.xlu1 }
 0x106   : > { %v772_v60 = vrot.slane %v765_v54, %v2289_v30  ;;  %v790_v61 = vcombine.low %v685_v45, %v749_v55 }
 0x107   : > { %v1069_v62 = vpop.trf.xlu0 }
 0x108   : > { %v773_v0 = vcombine.low %v764_v59, %v772_v60  ;;  %v797_v1 = vrot.slane %v790_v61, %v2289_v30 }
 0x109   : > { %v1085_v4 = vpop.trf.xlu1 }
 0x10a   : > { %v780_v5 = vrot.slane %v773_v0, %v2292_v37  ;;  %v798_v6 = vcombine.low %v789_v63, %v797_v1 }
 0x10b   : > { %v1101_v7 = vpop.trf.xlu0 }
 0x10c   : > { %v805_v8 = vrot.slane %v798_v6, %v2292_v37  ;;  %v781_v9 = vcombine.high %v780_v5, %v2233_v57  ;;  %v810_v14 = vshrl.u32 %v780_v5, 16 }
 0x10d   : > { %v1117_v12 = vpop.trf.xlu1 }
 0x10e   : > { %v809_v13 = vpack.i.b16 %v805_v8, %v780_v5  ;;  %v811_v15 = vshrl.u32 %v805_v8, 16  ;;  %v806_v16 = vcombine.high %v805_v8, %v2233_v57  ;;  %v816_v18 = vshrl.u32 %v781_v9, 16 }
 0x10f   : > { %v1133_v19 = vpop.trf.xlu0 }
 0x110   : > { %v825_v21 = vsel %vm823_vm1, %v809_v13, 0  ;;  %v812_v22 = vpack.i.b16 %v811_v15, %v810_v14  ;;  %v815_v23 = vpack.i.b16 %v806_v16, %v781_v9  ;;  %v817_v24 = vshrl.u32 %v806_v16, 16 }
 0x111   : > { %2117 = vmatpush3.bf16.msra.mxu0 %v825_v21  ;;  %v1149_v28 = vpop.trf.xlu1  ;;  %v1189_v29 = vcombine.low %v1069_v62, %v1133_v19  ;;  %v1016_v16 = vand.u32 127, %v343_v20 }
 0x112   : > { %v871_v31 = vsel %vm823_vm1, %v812_v22, 0  ;;  %2128 = vmatprep.subr.bf16.mxu0 %v2232_v50  ;;  %v818_v33 = vpack.i.b16 %v817_v24, %v816_v18  ;;  %v1223_v34 = vcombine.low %v1085_v4, %v1149_v28  ;;  %v917_v36 = vsel %vm823_vm1, %v815_v23, 0 }
 0x113   : > { %2123 = vmatpush3.bf16.msra.mxu1 %v871_v31  ;;  %v1165_v35 = vpop.trf.xlu0  ;;  %v1196_v38 = vrot.slane %v1189_v29, %v2289_v30  ;;  %vm1019_vm3 = vcmp.le.s32.totalorder %v1016_v16, %v2286_v26 }
 0x114   : > { %2119 = vmatmul.mubr.msk.bf16.vlgmr.msra.gmra.mrb[0].mxu0 %vm819_vm2, %v391_v17  ;;  %2134 = vmatprep.subr.bf16.mxu1 %v2232_v50  ;;  %v1197_v39 = vcombine.low %v1101_v7, %v1165_v35  ;;  %v963_v43 = vsel %vm823_vm1, %v818_v33, 0  ;;  %v1230_v44 = vrot.slane %v1223_v34, %v2289_v30 }
 0x115   : > { %2129 = vmatpush3.bf16.msra.mxu0 %v917_v36  ;;  %2130 = vmatprep.mubr.msk.bf16.mxu0 %vm2234_vm0, %v2232_v50  ;;  %v1181_v42 = vpop.trf.xlu1 }
 0x116   : > { %2125 = vmatmul.mubr.msk.bf16.vlgmr.msra.gmra.mrb[0].mxu1 %vm819_vm2, %v394_v32  ;;  %v1231_v45 = vcombine.low %v1117_v12, %v1181_v42  ;;  %v1204_v46 = vrot.slane %v1197_v39, %v2289_v30  ;;  %2140 = vmatprep.subr.bf16.mxu0 %v2232_v50 }
 0x117   : > { %2135 = vmatpush3.bf16.msra.mxu1 %v963_v43  ;;  %2136 = vmatprep.mubr.msk.bf16.mxu1 %vm2234_vm0, %v2232_v50 }
 0x118   : > { %v1238_v48 = vrot.slane %v1231_v45, %v2289_v30  ;;  %v1205_v49 = vcombine.low %v1196_v38, %v1204_v46  ;;  %v1206_v51 = vcombine.high %v1196_v38, %v1204_v46  ;;  %2146 = vmatprep.subr.bf16.mxu1 %v2232_v50 }
 0x11a   : > { %v1239_v53 = vcombine.low %v1230_v44, %v1238_v48  ;;  %v1240_v54 = vcombine.high %v1230_v44, %v1238_v48  ;;  %v1220_v55 = vrot.slane %v1206_v51, %v2292_v37  ;;  %v1213_v56 = vrot.slane %v1205_v49, %v2292_v37 }
 0x11c   : > { %2131 = vmatmul.mubr.msk.bf16.vlgmr.msra.gmra.mrb[4].mxu0 %vm819_vm2, %v397_v47  ;;  %v1254_v58 = vrot.slane %v1240_v54, %v2292_v37  ;;  %v1247_v59 = vrot.slane %v1239_v53, %v2292_v37  ;;  %v1261_v60 = vshrl.u32 %v1213_v56, 16  ;;  %v1221_v61 = vcombine.high %v1213_v56, %v2233_v57 }
 0x11d   : > { %v1277_v62 = vshrl.u32 %v1220_v55, 16  ;;  %2142 = vmatprep.mubr.msk.bf16.mxu0 %vm2234_vm0, %v2232_v50  ;;  %v1222_v5 = vcombine.high %v1220_v55, %v2233_v57 }
 0x11e   : > { %2137 = vmatmul.mubr.msk.bf16.vlgmr.msra.gmra.mrb[4].mxu1 %vm819_vm2, %v400_v52  ;;  %v1259_v63 = vpack.i.b16 %v1247_v59, %v1213_v56  ;;  %v1262_v0 = vshrl.u32 %v1247_v59, 16  ;;  %v1255_v1 = vcombine.high %v1247_v59, %v2233_v57  ;;  %v1278_v2 = vshrl.u32 %v1254_v58, 16 }
 0x11f   : > { %2148 = vmatprep.mubr.msk.bf16.mxu1 %vm2234_vm0, %v2232_v50  ;;  %v1269_v7 = vshrl.u32 %v1221_v61, 16  ;;  %v1256_v9 = vcombine.high %v1254_v58, %v2233_v57  ;;  %v1275_v10 = vpack.i.b16 %v1254_v58, %v1220_v55  ;;  %v1285_v12 = vshrl.u32 %v1222_v5, 16 }
 0x120   : > { %1289 = vxpose.xlu0.c.b16.start.end [1/1] (short) (narrow) %v1259_v63, 16  ;;  %v1263_v3 = vpack.i.b16 %v1262_v0, %v1261_v60  ;;  %v1267_v4 = vpack.i.b16 %v1255_v1, %v1221_v61  ;;  %v1279_v6 = vpack.i.b16 %v1278_v2, %v1277_v62  ;;  %v1270_v8 = vshrl.u32 %v1255_v1, 16 }
 0x121   : > { %v1286_v13 = vshrl.u32 %v1256_v9, 16  ;;  %v1283_v14 = vpack.i.b16 %v1256_v9, %v1222_v5 }
 0x122   : > { %1305 = vxpose.xlu1.c.b16.start.end [1/1] (short) (narrow) %v1263_v3, 16  ;;  %v1271_v11 = vpack.i.b16 %v1270_v8, %v1269_v7 }
 0x123   : > { %v1287_v15 = vpack.i.b16 %v1286_v13, %v1285_v12 }
 0x124   : > { %1321 = vxpose.xlu0.c.b16.start.end [1/1] (short) (narrow) %v1267_v4, 16 }
 0x126   : > { %1369 = vxpose.xlu1.c.b16.start.end [1/1] (short) (narrow) %v1279_v6, 16 }
 0x128   : > { %1353 = vxpose.xlu0.c.b16.start.end [1/1] (short) (narrow) %v1275_v10, 16 }
 0x12a   : > { %1337 = vxpose.xlu1.c.b16.start.end [1/1] (short) (narrow) %v1271_v11, 16 }
 0x12c   : > { %1385 = vxpose.xlu0.c.b16.start.end [1/1] (short) (narrow) %v1283_v14, 16 }
 0x12e   : > { %1401 = vxpose.xlu1.c.b16.start.end [1/1] (short) (narrow) %v1287_v15, 16 }
 0x186   : > { %v1297_v62 = vpop.trf.xlu0 }
 0x188   : > { %v1313_v61 = vpop.trf.xlu1 }
 0x18a   : > { %v1329_v63 = vpop.trf.xlu0 }
 0x18c   : > { %v1377_v26 = vpop.trf.xlu1 }
 0x18d   : > { %v1442_v15 = vcombine.low %v1313_v61, %v1377_v26 }
 0x18e   : > { %v1361_v4 = vpop.trf.xlu0 }
 0x18f   : > { %v1417_v16 = vcombine.low %v1297_v62, %v1361_v4 }
 0x190   : > { %v1345_v3 = vpop.trf.xlu1 }
 0x192   : > { %v1393_v14 = vpop.trf.xlu0 }
 0x194   : > { %v1409_v13 = vpop.trf.xlu1 }
 0x1e7   : > { %v861_v17 = vpop.f32.mrb[0].mxu0 }
 0x1e8   : > { %v1005_v18 = vmul.f32 0.35355338, %v861_v17  ;;  %v2120_v19 = vpop.f32.mrb[1].mxu0  ;;  %v1450_v17 = vcombine.low %v1345_v3, %v1409_v13 }
 0x1e9   : > { %v864_v21 = vpop.f32.mrb[2].mxu0  ;;  %v907_v22 = vpop.f32.mrb[0].mxu1  ;;  %v1449_v19 = vrot.slane %v1442_v15, %v2289_v30 }
 0x1ea   : > { %v1022_v23 = vsel %vm1019_vm3, %v1005_v18, -10000.0  ;;  %v1006_v24 = vmul.f32 0.35355338, %v907_v22  ;;  %v2121_v25 = vpop.f32.mrb[3].mxu0  ;;  %v2126_v27 = vpop.f32.mrb[1].mxu1  ;;  %v1425_v18 = vcombine.low %v1329_v63, %v1393_v14  ;;  %v1424_v21 = vrot.slane %v1417_v16, %v2289_v30 }
 0x1eb   : > { %v1026_v28 = vsel %vm819_vm2, %v1022_v23, -inf  ;;  %v910_v29 = vpop.f32.mrb[2].mxu1  ;;  %v1457_v22 = vrot.slane %v1450_v17, %v2289_v30 }
 0x1ec   : > { %v1023_v31 = vsel %vm1019_vm3, %v1006_v24, -10000.0  ;;  %v2127_v20 = vpop.f32.mrb[3].mxu1 }
 0x1ed   : > { %v1027_v32 = vsel %vm819_vm2, %v1023_v31, -inf  ;;  %v1458_v24 = vcombine.low %v1449_v19, %v1457_v22 }
 0x1ee   : > { %v1030_v33 = vmax.f32 %v1026_v28, %v1027_v32 }
 0x1ef   : > { %v953_v34 = vpop.f32.mrb[4].mxu0  ;;  %v1465_v32 = vrot.slane %v1458_v24, %v2292_v37 }
 0x1f0   : > { %v1007_v35 = vmul.f32 0.35355338, %v953_v34  ;;  %v2132_v36 = vpop.f32.mrb[5].mxu0 }
 0x1f1   : > { %v956_v38 = vpop.f32.mrb[6].mxu0  ;;  %v999_v39 = vpop.f32.mrb[4].mxu1 }
 0x1f2   : > { %v1024_v40 = vsel %vm1019_vm3, %v1007_v35, -10000.0  ;;  %v1008_v41 = vmul.f32 0.35355338, %v999_v39  ;;  %v2133_v42 = vpop.f32.mrb[7].mxu0  ;;  %v2138_v43 = vpop.f32.mrb[5].mxu1  ;;  %v1471_v39 = vshrl.u32 %v1465_v32, 16 }
 0x1f3   : > { %v1028_v44 = vsel %vm819_vm2, %v1024_v40, -inf  ;;  %v1002_v45 = vpop.f32.mrb[6].mxu1  ;;  %v1466_v43 = vcombine.high %v1465_v32, %v2233_v57 }
 0x1f4   : > { %v1025_v46 = vsel %vm1019_vm3, %v1008_v41, -10000.0  ;;  %v2139_v47 = vpop.f32.mrb[7].mxu1 }
 0x1f5   : > { %v1029_v48 = vsel %vm819_vm2, %v1025_v46, -inf }
 0x1f6   : > { %v1031_v49 = vmax.f32 %v1028_v44, %v1029_v48 }
 0x1f8   : > { %v1032_v51 = vmax.f32 %v1030_v33, %v1031_v49  ;;  %v1477_v49 = vshrl.u32 %v1466_v43, 16 }
 0x1fa   : > { %v1033_v52 = vsub.f32 %v1022_v23, %v1032_v51  ;;  %v1034_v53 = vsub.f32 %v1023_v31, %v1032_v51  ;;  %v1035_v54 = vsub.f32 %v1024_v40, %v1032_v51  ;;  %v1036_v55 = vsub.f32 %v1025_v46, %v1032_v51 }
 0x1fb   : > { %v1432_v23 = vrot.slane %v1425_v18, %v2289_v30 }
 0x1fc   : > { %v1037_v56 = vmul.f32 1.442695, %v1033_v52  ;;  %v1039_v58 = vmul.f32 1.442695, %v1034_v53  ;;  %v1041_v59 = vmul.f32 1.442695, %v1035_v54 }
 0x1fd   : > { %v1043_v60 = vmul.f32 1.442695, %v1036_v55  ;;  %v1433_v25 = vcombine.low %v1424_v21, %v1432_v23 }
 0x1fe   : > { %2196 = vpow2.f32 %v1037_v56 }
 0x1ff   : > { %2198 = vpow2.f32 %v1039_v58  ;;  %v1440_v33 = vrot.slane %v1433_v25, %v2292_v37 }
 0x200   : > { %2200 = vpow2.f32 %v1041_v59 }
 0x201   : > { %2202 = vpow2.f32 %v1043_v60  ;;  %v1470_v40 = vshrl.u32 %v1440_v33, 16  ;;  %v1441_v44 = vcombine.high %v1440_v33, %v2233_v57  ;;  %v1469_v45 = vpack.i.b16 %v1465_v32, %v1440_v33 }
 0x203   : > { %v1472_v46 = vpack.i.b16 %v1471_v39, %v1470_v40  ;;  %v1476_v51 = vshrl.u32 %v1441_v44, 16  ;;  %v1475_v57 = vpack.i.b16 %v1466_v43, %v1441_v44 }
 0x205   : > { %v1478_v52 = vpack.i.b16 %v1477_v49, %v1476_v51  ;;  %v1859_v49 = vld [vmem:[#allocation2] sm:$0xff] }
 0x208   : > { %v2197_v0 = vpop.eup %2196 }
 0x209   : > { %v2199_v1 = vpop.eup %2198  ;;  %v1045_v2 = vsel %vm819_vm2, %v2197_v0, 0.0 }
 0x20a   : > { %v2201_v5 = vpop.eup %2200  ;;  %v1046_v6 = vsel %vm819_vm2, %v2199_v1, 0.0 }
 0x20b   : > { %v2203_v7 = vpop.eup %2202  ;;  %v1047_v8 = vadd.f32 %v1046_v6, %v1045_v2  ;;  %v1048_v9 = vsel %vm819_vm2, %v2201_v5, 0.0 }
 0x20c   : > { %v1050_v11 = vsel %vm819_vm2, %v2203_v7, 0.0 }
 0x20d   : > { %v1049_v10 = vadd.f32 %v1048_v9, %v1047_v8 }
 0x20f   : > { %v1051_v12 = vadd.f32 %v1050_v11, %v1049_v10 }
 0x211   : > { %2204 = vrcp.f32 %v1051_v12 }
 0x21b   : > { %v2205_v27 = vpop.eup %2204 }
 0x21c   : > { %v1053_v28 = vmul.f32 %v2205_v27, %v2197_v0  ;;  %v1054_v29 = vmul.f32 %v2205_v27, %v2199_v1  ;;  %v1055_v31 = vmul.f32 %v2205_v27, %v2201_v5  ;;  %v1056_v20 = vmul.f32 %v2205_v27, %v2203_v7 }
 0x21e   : > { %v1057_v34 = vpack.c.bf16 %v1053_v28, %v1053_v28  ;;  %v1058_v35 = vpack.c.bf16 %v1054_v29, %v1054_v29  ;;  %v1059_v41 = vpack.c.bf16 %v1055_v31, %v1055_v31  ;;  %v1060_v42 = vpack.c.bf16 %v1056_v20, %v1056_v20 }
 0x220   : > { %v1483_v36 = vsel %vm819_vm2, %v1057_v34, 0  ;;  %v1529_v38 = vsel %vm819_vm2, %v1058_v35, 0  ;;  %v1575_v47 = vsel %vm819_vm2, %v1059_v41, 0  ;;  %v1621_v48 = vsel %vm819_vm2, %v1060_v42, 0 }
 0x221   : > { %2141 = vmatpush3.bf16.xpose.msra.mxu0 %v1483_v36  ;;  %2147 = vmatpush3.bf16.xpose.msra.mxu1 %v1529_v38 }
 0x222   : > { %2152 = vmatprep.subr.bf16.mxu0 %v2232_v50  ;;  %2158 = vmatprep.subr.bf16.mxu1 %v2232_v50 }
 0x228   : > { %2143 = vmatmul.mubr.msk.bf16.vlgmr.msra.gmra.mrb[8].mxu0 %vm819_vm2, %v1469_v45  ;;  %2149 = vmatmul.mubr.msk.bf16.vlgmr.msra.gmra.mrb[8].mxu1 %vm819_vm2, %v1472_v46 }
 0x229   : > { %2153 = vmatpush3.bf16.xpose.msra.mxu0 %v1575_v47  ;;  %2159 = vmatpush3.bf16.xpose.msra.mxu1 %v1621_v48 }
 0x22a   : > { %2154 = vmatprep.mubr.msk.bf16.mxu0 %vm2234_vm0, %v2232_v50  ;;  %2160 = vmatprep.mubr.msk.bf16.mxu1 %vm2234_vm0, %v2232_v50 }
 0x230   : > { %2155 = vmatmul.mubr.msk.bf16.vlgmr.msra.gmra.mrb[12].mxu0 %vm819_vm2, %v1475_v57  ;;  %2161 = vmatmul.mubr.msk.bf16.vlgmr.msra.gmra.mrb[12].mxu1 %vm819_vm2, %v1478_v52 }
 0x2fb   : > { %v1519_v53 = vpop.f32.mrb[8].mxu0  ;;  %v1565_v54 = vpop.f32.mrb[8].mxu1 }
 0x2fc   : > { %1695 = vxpose.xlu1.b32.start.end [1/1] (short) (narrow) %v1565_v54, 8  ;;  %v2150_v55 = vpop.f32.mrb[9].mxu1  ;;  %1663 = vxpose.xlu0.b32.start.end [1/1] (short) (narrow) %v1519_v53, 8  ;;  %v2144_v56 = vpop.f32.mrb[9].mxu0 }
 0x2fd   : > { %v1522_v58 = vpop.f32.mrb[10].mxu0  ;;  %v1568_v59 = vpop.f32.mrb[10].mxu1 }
 0x2fe   : > { %v2145_v60 = vpop.f32.mrb[11].mxu0  ;;  %v2151_v61 = vpop.f32.mrb[11].mxu1 }
 0x303   : > { %v1611_v62 = vpop.f32.mrb[12].mxu0  ;;  %v1657_v26 = vpop.f32.mrb[12].mxu1 }
 0x304   : > { %v2162_v63 = vpop.f32.mrb[13].mxu1  ;;  %1727 = vxpose.xlu0.b32.start.end [1/1] (short) (narrow) %v1611_v62, 8  ;;  %v2156_v0 = vpop.f32.mrb[13].mxu0 }
 0x305   : > { %v1614_v1 = vpop.f32.mrb[14].mxu0  ;;  %v1660_v2 = vpop.f32.mrb[14].mxu1 }
 0x306   : > { %v2157_v3 = vpop.f32.mrb[15].mxu0  ;;  %v2163_v4 = vpop.f32.mrb[15].mxu1 }
 0x308   : > { %1759 = vxpose.xlu0.b32.start.end [1/1] (short) (narrow) %v1657_v26, 8 }
 0x37c   : > { %v1679_v5 = vpop.trf.xlu0  ;;  %v1711_v7 = vpop.trf.xlu1 }
 0x384   : > { %v1743_v6 = vpop.trf.xlu0 }
 0x385   : > { %v1791_v8 = vcombine.low %v1679_v5, %v1743_v6  ;;  %v1792_v9 = vcombine.high %v1679_v5, %v1743_v6 }
 0x387   : > { %v1799_v13 = vrot.slane %v1791_v8, %v2289_v30  ;;  %v1806_v14 = vrot.slane %v1792_v9, %v2289_v30 }
 0x388   : > { %v1775_v10 = vpop.trf.xlu0 }
 0x389   : > { %v1807_v11 = vcombine.low %v1711_v7, %v1775_v10  ;;  %v1808_v12 = vcombine.high %v1711_v7, %v1775_v10 }
 0x38b   : > { %v1815_v15 = vrot.slane %v1807_v11, %v2289_v30  ;;  %v1822_v16 = vrot.slane %v1808_v12, %v2289_v30 }
 0x38d   : > { %v1823_v17 = vcombine.low %v1799_v13, %v1815_v15  ;;  %v1824_v18 = vcombine.high %v1799_v13, %v1815_v15  ;;  %v1839_v19 = vcombine.low %v1806_v14, %v1822_v16  ;;  %v1840_v21 = vcombine.high %v1806_v14, %v1822_v16 }
 0x38f   : > { %v1831_v22 = vrot.slane %v1823_v17, %v2292_v37  ;;  %v1838_v23 = vrot.slane %v1824_v18, %v2292_v37  ;;  %v1847_v24 = vrot.slane %v1839_v19, %v2292_v37  ;;  %v1854_v25 = vrot.slane %v1840_v21, %v2292_v37 }
 0x391   : > { %v1860_v27 = vcombine.low %v1831_v22, %v1838_v23  ;;  %v2093_v28 = vcombine.high %v1831_v22, %v1838_v23  ;;  %v1876_v29 = vcombine.low %v1847_v24, %v1854_v25  ;;  %v2094_v31 = vcombine.high %v1847_v24, %v1854_v25 }
 0x393   : > { %v1867_v20 = vrot.slane %v1860_v27, %v2289_v30  ;;  %v1875_v32 = vrot.slane %v2093_v28, %v2289_v30  ;;  %v1883_v33 = vrot.slane %v1876_v29, %v2289_v30  ;;  %v1891_v50 = vrot.slane %v2094_v31, %v2289_v30 }
 0x395   : > { %v1893_v34 = vcombine.high %v1867_v20, %v1875_v32  ;;  %v1909_v35 = vcombine.high %v1883_v33, %v1891_v50  ;;  %v1892_v36 = vcombine.low %v1867_v20, %v1875_v32  ;;  %v1908_v38 = vcombine.low %v1883_v33, %v1891_v50 }
 0x397   : > { %v1907_v39 = vrot.slane %v1893_v34, %v2292_v37  ;;  %v1923_v40 = vrot.slane %v1909_v35, %v2292_v37  ;;  %v1900_v41 = vrot.slane %v1892_v36, %v2292_v37  ;;  %v1916_v42 = vrot.slane %v1908_v38, %v2292_v37 }
 0x399   : > { %v1926_v43 = vcombine.low %v1907_v39, %v1923_v40  ;;  %v1925_v44 = vcombine.high %v1900_v41, %v1916_v42  ;;  %v1924_v45 = vcombine.low %v1900_v41, %v1916_v42  ;;  %v1927_v30 = vcombine.high %v1907_v39, %v1923_v40 }
 0x39b   : > { %1933 = vrot.lane.b32.xlu0 %v1926_v43, %s2235_s26  ;;  %1929 = vrot.lane.b32.xlu1 %v1925_v44, %s2236_s27 }
 0x39f   : > { %1937 = vrot.lane.b32.xlu1 %v1927_v30, %s2237_s28 }
 0x40d   : > { %v1930_v46 = vpop.permute.xlu1 %1929  ;;  %v1934_v47 = vpop.permute.xlu0 %1933 }
 0x40e   : > { %v1940_v48 = vsel %vm819_vm2, %v1924_v45, %v1930_v46 }
 0x40f   : > { %v1942_v37 = vsel %vm1941_vm5, %v1940_v48, %v1934_v47 }
 0x411   : > { %v1938_v51 = vpop.permute.xlu1 %1937 }
 0x412   : > { %v1944_v57 = vsel %vm1943_vm6, %v1942_v37, %v1938_v51 }
 0x413   : > { %v1945_v52 = vadd.f32 %v1944_v57, %v1859_v49 }
 0x415   : > { %1947 = vst.msk [vmem:[#allocation2] sm:$0xff] %vm289_vm4, %v1945_v52 }
 0x41c   : > { %v1951_v53 = vld [vmem:[#allocation2] sm:$0xff] }
 0x41d   : > { %1952 = vst.msk [vmem:[%s283_s5] sm:$0xff] %vm289_vm4, %v1951_v53 }
 0x41e PF: > { %s13_s14 = sadd.s32 1, %s2228_s14   ;;  %s2446_s12 = smov %s2224_s13 }
 0x41f   : > { %p10_p5 = scmp.ge.s32.totalorder %s13_s14, 4   ;;  %s2447_s13 = smov %s2449_s15 }
 0x421   :  { %12 = sbr.rel (!%p10_p5) target bundleno = 2 (0x2), region = 76 }

// kernel: _lambda_.17
= control target key start
LH: loop header
LB: loop body
LE: loop exit
PB: predicated region body
PF: predicated region fallthrough
CT: control target
= control target key end

     0   :  { %vm21_vm0 = vcmask 261120   ;;  %s295_s0 = inlined_call_operand.vmem [shape: f32[16,32], index: 0, kind: input, shape index: {}]   ;;  %s296_s1 = inlined_call_operand.vmem [shape: f32[1,32], index: 1, kind: input, shape index: {}]   ;;  %s297_s2 = inlined_call_operand.vmem [shape: f32[1,32], index: 2, kind: input, shape index: {}]   ;;  %s298_s3 = inlined_call_operand.vmem [shape: f32[64,32], index: 3, kind: input, shape index: {}]   ;;  %s299_s4 = inlined_call_operand.hbm [shape: f32[16,64], index: 4, kind: output, shape index: {}]  }
   0x1   :  { %v19_v0 = vld [vmem:[%s295_s0] sm:$0xff]  ;;  %v20_v1 = vld [vmem:[%s295_s0 + $0x8] sm:$0xff] }
   0x2   :  { %9 = vsyncpa [#allocation3], 0  ;;  %v22_v2 = vsel %vm21_vm0, %v19_v0, 0.0  ;;  %v25_v3 = vsel %vm21_vm0, %v20_v1, 0.0  ;;  %v68_v4 = vld [vmem:[%s298_s3] sm:$0xff]  ;;  %v69_v5 = vld [vmem:[%s298_s3 + $0x8] sm:$0xff] }
   0x3   :  { %23 = vadd.xlane.f32.xlu0 %v22_v2  ;;  %v208_v6 = vmov 0.0   ;;  %v76_v7 = vpack.c.bf16 %v69_v5, %v68_v4  ;;  %v70_v19 = vld [vmem:[%s298_s3 + $0x10] sm:$0xff]  ;;  %v71_v20 = vld [vmem:[%s298_s3 + $0x18] sm:$0xff]  ;;  %v72_v23 = vld [vmem:[%s298_s3 + $0x20] sm:$0xff]  ;;  %vm209_vm1 = vmmov 0   ;;  %s210_s11 = smov [#allocation2]  }
   0x4   :  { %163 = vmatprep.subr.bf16.mxu0 %v208_v6  ;;  %v77_v21 = vpack.c.bf16 %v71_v20, %v70_v19  ;;  %v73_v24 = vld [vmem:[%s298_s3 + $0x28] sm:$0xff]  ;;  %v74_v27 = vld [vmem:[%s298_s3 + $0x30] sm:$0xff]  ;;  %v75_v28 = vld [vmem:[%s298_s3 + $0x38] sm:$0xff]  ;;  %171 = vmatprep.mubr.msk.bf16.mxu0 %vm209_vm1, %v208_v6  ;;  %s144_s12 = sshll.u32 %s210_s11, 4  ;;  %vm136_vm2 = vcmask 523264   ;;  %s145_s12 = int_to_ptr.vmem [resolvable:$true] %s144_s12 }
   0x5   :  { %v84_v8 = vsel %vm21_vm0, %v76_v7, 0  ;;  %v78_v25 = vpack.c.bf16 %v73_v24, %v72_v23  ;;  %v79_v29 = vpack.c.bf16 %v75_v28, %v74_v27  ;;  %v155_v39 = vld [vmem:[%s296_s1] ss:$0 sm:$0xff]  ;;  %s184_s1 = scalar_lea.vmem %s145_s12, 256  ;;  %p189_p1 = scmp.lt.s32.totalorder %s145_s12, %s145_s12 }
   0x6   :  { %164 = vmatpush3.bf16.xpose.msra.mxu0 %v84_v8  ;;  %v87_v22 = vsel %vm21_vm0, %v77_v21, 0  ;;  %v156_v43 = vld [vmem:[%s297_s2] ss:$0 sm:$0xff]  ;;  %p185_p0 = scmp.ne.s32.totalorder %s145_s12, %s184_s1  ;;  %p190_p2 = scmp.lt.s32.totalorder %s184_s1, %s184_s1 }
   0x7   :  { %26 = vadd.xlane.f32.xlu0 %v25_v3  ;;  %165 = vmatprep.subr.bf16.mxu0 %v208_v6  ;;  %v90_v26 = vsel %vm21_vm0, %v78_v25, 0  ;;  %v93_v30 = vsel %vm21_vm0, %v79_v29, 0 }
   0x8   :  { %p191_p3 = por %p190_p2, %p189_p1 }
   0xa   :  { %p192_p4 = pnand %p191_p3, %p185_p0 }
   0xe   :  { %166 = vmatpush3.bf16.xpose.msra.mxu0 %v87_v22 }
   0xf   :  { %167 = vmatprep.subr.bf16.mxu0 %v208_v6 }
  0x16   :  { %168 = vmatpush3.bf16.xpose.msra.mxu0 %v90_v26 }
  0x17   :  { %169 = vmatprep.subr.bf16.mxu0 %v208_v6 }
  0x1e   :  { %170 = vmatpush3.bf16.xpose.msra.mxu0 %v93_v30 }
  0x90   :  { %v24_v9 = vpop.xlane.xlu0 %23 }
  0x91   :  { %v29_v10 = vmul.f32 0.03125, %v24_v9 }
  0x93   :  { %v31_v11 = vsub.f32 %v19_v0, %v29_v10 }
  0x94   :  { %v27_v12 = vpop.xlane.xlu0 %26 }
  0x95   :  { %v30_v13 = vmul.f32 0.03125, %v27_v12  ;;  %v33_v14 = vmul.f32 %v31_v11, %v31_v11 }
  0x97   :  { %v32_v15 = vsub.f32 %v20_v1, %v30_v13  ;;  %v35_v16 = vsel %vm21_vm0, %v33_v14, 0.0 }
  0x98   :  { %36 = vadd.xlane.f32.xlu1 %v35_v16 }
  0x99   :  { %v34_v17 = vmul.f32 %v32_v15, %v32_v15 }
  0x9b   :  { %v38_v18 = vsel %vm21_vm0, %v34_v17, 0.0 }
  0x9c   :  { %39 = vadd.xlane.f32.xlu1 %v38_v18 }
 0x125   :  { %v37_v31 = vpop.xlane.xlu1 %36 }
 0x126   :  { %v41_v32 = vmul.f32 0.03125, %v37_v31 }
 0x128   :  { %v43_v33 = vadd.f32 1e-05, %v41_v32 }
 0x129   :  { %v40_v34 = vpop.xlane.xlu1 %39 }
 0x12a   :  { %180 = vrsqrt.f32 %v43_v33  ;;  %v42_v35 = vmul.f32 0.03125, %v40_v34 }
 0x12c   :  { %v44_v36 = vadd.f32 1e-05, %v42_v35 }
 0x12e   :  { %182 = vrsqrt.f32 %v44_v36 }
 0x134   :  { %v181_v37 = vpop.eup %180 }
 0x135   :  { %v47_v38 = vmul.f32 %v181_v37, %v31_v11 }
 0x137   :  { %v56_v42 = vmul.f32 %v155_v39, %v47_v38 }
 0x138   :  { %v183_v40 = vpop.eup %182 }
 0x139   :  { %v48_v41 = vmul.f32 %v183_v40, %v32_v15  ;;  %v65_v45 = vadd.f32 %v156_v43, %v56_v42 }
 0x13b   :  { %v57_v44 = vmul.f32 %v155_v39, %v48_v41 }
 0x13d   :  { %v66_v46 = vadd.f32 %v156_v43, %v57_v44 }
 0x13f   :  { %v67_v47 = vpack.c.bf16 %v66_v46, %v65_v45 }
 0x141   :  { %172 = vmatmul.mubr.msk.bf16.vlgmr.msra.gmra.mrb[0].mxu0 %vm21_vm0, %v67_v47 }
 0x214   :  { %v129_v48 = vpop.f32.mrb[0].mxu0 }
 0x215   :  { %137 = vst.msk [vmem:[#allocation2] sm:$0xff] %vm136_vm2, %v129_v48  ;;  %v173_v49 = vpop.f32.mrb[1].mxu0 }
 0x216   :  { %v132_v50 = vpop.f32.mrb[2].mxu0 }
 0x217   :  { %138 = vst.msk [vmem:[#allocation2 + $0x8] sm:$0xff] %vm136_vm2, %v132_v50  ;;  %v174_v51 = vpop.f32.mrb[3].mxu0 }
 0x218   :  { %195 = shalt.err (!%p192_p4)
}
 0x219   :  { %s196_s14 = scalar_lea.hbm %s299_s4, 256 }
 0x21a   :  { %p197_p5 = scmp.ne.s32.totalorder %s299_s4, %s196_s14  ;;  %p200_p6 = scmp.lt.u32.totalorder %s196_s14, %s299_s4 }
 0x21c   :  { %p202_p7 = pnand %p200_p6, %p197_p5 }
 0x21e   :  { %205 = shalt.err (!%p202_p7)
}
 0x21f   :  { %s211_s19 = smov 128   ;;  %s212_s20 = smov 8  }
 0x220   :  { %150 = dma.vmem_to_hbm [thread:$0]  %s145_s12, 256, %s299_s4, [#allocation3], %s211_s19, %s211_s19, %s212_s20  }
 0x221   :  { %206 = dma.done.wait [#allocation3], 256  }
 0x222   :  { %207 = vsyncadd [#allocation3], 4294967040 }
 0x223   :  { %154 = vsyncpa [#allocation3], 1 }

</bundles_post_ra>
